<compile_context>
chip_gen: v7x
topology: tpu7x:2x2x1
jax: 0.10.0
libtpu: 0.0.40
codegen_flags: <defaults>
</compile_context>

<pallas_src>
import functools
import math

import jax
import jax.numpy as jnp
from jax.experimental import pallas as pl
from jax.experimental.pallas import tpu as pltpu


def linformer_kernel(x_ref, wq_ref, wk_ref, wv_ref, pkv_ref, wo_ref,
                     o_ref, kp_ref, vp_ref, *, num_heads, head_dims, tl):
    l = pl.program_id(1)
    H, hd = num_heads, head_dims
    Kd = kp_ref.shape[0]

    # ---- once per batch element: reassociated Linformer compression ------
    #   kp = (Pk^T @ x) @ Wk^T ,  vp = (Pv^T @ x) @ Wv^T   (exact rewrite of
    #   the reference P^T @ (x @ W^T); far fewer FLOPs since Kd <= L and no
    #   (L, D) f32 intermediates).
    @pl.when(l == 0)
    def _():
        xc = jnp.dot(pkv_ref[...], x_ref[0],
                     preferred_element_type=jnp.float32).astype(jnp.bfloat16)   # (2Kd, D)
        kp_ref[...] = jnp.dot(xc[:Kd], wk_ref[...],
                              preferred_element_type=jnp.float32).astype(jnp.bfloat16)
        vp_ref[...] = jnp.dot(xc[Kd:], wv_ref[...],
                              preferred_element_type=jnp.float32).astype(jnp.bfloat16)

    # ---- per L-tile: Q projection, per-head attention, fused out-proj ----
    row0 = pl.multiple_of(l * tl, tl)
    xl = x_ref[0, pl.ds(row0, tl), :]                                 # (tl, D) bf16

    # Softmax scale was folded into Wq on the host.
    q = jnp.dot(xl, wq_ref[...],
                preferred_element_type=jnp.float32).astype(jnp.bfloat16)         # (tl, D)
    kp = kp_ref[...]                                                  # (Kd, D) bf16
    vp = vp_ref[...]                                                  # (Kd, D) bf16
    wo = wo_ref[...]                                                  # (D, D)  bf16

    acc = jnp.zeros((tl, wo.shape[1]), jnp.float32)
    for h in range(H):                                                # static, small
        sl = slice(h * hd, (h + 1) * hd)                              # 128-aligned lane slice
        # scores: (tl, hd) x (Kd, hd) -> (tl, Kd), f32 accumulation on MXU
        s = jnp.einsum('ld,kd->lk', q[:, sl], kp[:, sl],
                       preferred_element_type=jnp.float32)
        s = s - jnp.max(s, axis=-1, keepdims=True)
        p = jnp.exp(s)
        p = p * pl.reciprocal(jnp.sum(p, axis=-1, keepdims=True), approx=True)
        # TODO(synk): dropout not implemented; module default dropout_p=0.0 -> identity.
        o_h = jnp.dot(p.astype(jnp.bfloat16), vp[:, sl],
                      preferred_element_type=jnp.float32)                         # (tl, hd)
        # fold output projection per head: out += o_h @ Wo^T[h*hd:(h+1)*hd, :]
        acc = acc + jnp.dot(o_h.astype(jnp.bfloat16), wo[sl, :],
                            preferred_element_type=jnp.float32)                   # (tl, D)

    o_ref[0] = acc.astype(o_ref.dtype)


def linformer_pallas(x, wq, wk, wv, proj_k, proj_v, wo, *, num_heads, tl=128):
    B, L, D = x.shape
    Kd = proj_k.shape[1]
    head_dims = D // num_heads
    scale = head_dims ** (-0.5)
    assert L % tl == 0 and D % num_heads == 0

    # Host-side glue (plain JAX): transpose weights to (in, out), fold the
    # softmax scale into Wq in f32 *before* the bf16 cast, and stack the two
    # sequence-compression projections into one (2Kd, L) operand.
    cast = lambda a: a.astype(jnp.bfloat16)
    x_b = cast(x)
    wq_t = cast(wq.T * scale)
    wk_t, wv_t, wo_t = cast(wk.T), cast(wv.T), cast(wo.T)
    pkv_t = cast(jnp.concatenate([proj_k.T, proj_v.T], axis=0))       # (2Kd, L)

    kernel = functools.partial(
        linformer_kernel, num_heads=num_heads, head_dims=head_dims, tl=tl)

    # Grid-invariant weight blocks: same block index every step -> DMA'd once.
    const = lambda shape: pl.BlockSpec(shape, lambda b, l: tuple(0 for _ in shape))

    return pl.pallas_call(
        kernel,
        out_shape=jax.ShapeDtypeStruct((B, L, D), jnp.bfloat16),
        grid_spec=pltpu.PrefetchScalarGridSpec(
            num_scalar_prefetch=0,
            grid=(B, L // tl),
            in_specs=[
                # x stays resident across the L-tile axis (index map returns
                # the same block for every l) -> one HBM fetch per batch elem.
                pl.BlockSpec((1, L, D), lambda b, l: (b, 0, 0)),      # x (bf16)
                const((D, D)),                                        # wq^T * scale
                const((D, D)),                                        # wk^T
                const((D, D)),                                        # wv^T
                const((2 * Kd, L)),                                   # [proj_k^T; proj_v^T]
                const((D, D)),                                        # wo^T
            ],
            out_specs=pl.BlockSpec((1, tl, D), lambda b, l: (b, l, 0)),
            scratch_shapes=[
                pltpu.VMEM((Kd, D), jnp.bfloat16),                    # kp (per batch elem)
                pltpu.VMEM((Kd, D), jnp.bfloat16),                    # vp (per batch elem)
            ],
        ),
        compiler_params=pltpu.CompilerParams(
            dimension_semantics=("parallel", "arbitrary"),
            vmem_limit_bytes=48 * 1024 * 1024),
    )(x_b, wq_t, wk_t, wv_t, pkv_t, wo_t)


def linformer_ref(x, wq, wk, wv, proj_k, proj_v, wo, *, num_heads):
    """Pure-JAX f32 reference mirroring the PyTorch forward."""
    B, L, D = x.shape
    head_dims = D // num_heads
    scale = head_dims ** (-0.5)

    q = x @ wq.T
    k = x @ wk.T
    v = x @ wv.T
    k = jnp.einsum('bld,lk->bkd', k, proj_k)
    v = jnp.einsum('bld,lk->bkd', v, proj_v)

    def split_heads(t):
        return t.reshape(t.shape[0], t.shape[1], num_heads, head_dims).transpose(0, 2, 1, 3)

    qh, kh, vh = split_heads(q), split_heads(k), split_heads(v)
    s = jnp.einsum('bhld,bhkd->bhlk', qh, kh) * scale
    p = jax.nn.softmax(s, axis=-1)
    o = jnp.einsum('bhlk,bhkd->bhld', p, vh)
    o = o.transpose(0, 2, 1, 3).reshape(B, L, D)
    return o @ wo.T


if __name__ == "__main__":
    # Small, lane-aligned shapes consistent with the module
    # (head_dims = 128, all of L / k_dim / embed_dim multiples of 128).
    B, L = 2, 256
    embed_dim = 256
    num_heads = 2
    k_dim = 128

    key = jax.random.PRNGKey(0)
    ks = jax.random.split(key, 8)

    # Deterministic synthetic parameter init (PyTorch-style uniform ranges).
    std_lin = 1.0 / math.sqrt(embed_dim)
    std_proj = 1.0 / math.sqrt(k_dim)

    x = jax.random.normal(ks[0], (B, L, embed_dim), dtype=jnp.float32)
    wq = jax.random.uniform(ks[1], (embed_dim, embed_dim), jnp.float32, -std_lin, std_lin)
    wk = jax.random.uniform(ks[2], (embed_dim, embed_dim), jnp.float32, -std_lin, std_lin)
    wv = jax.random.uniform(ks[3], (embed_dim, embed_dim), jnp.float32, -std_lin, std_lin)
    wo = jax.random.uniform(ks[4], (embed_dim, embed_dim), jnp.float32, -std_lin, std_lin)
    proj_k = jax.random.uniform(ks[5], (L, k_dim), jnp.float32, -std_proj, std_proj)
    proj_v = jax.random.uniform(ks[6], (L, k_dim), jnp.float32, -std_proj, std_proj)

    out = linformer_pallas(x, wq, wk, wv, proj_k, proj_v, wo, num_heads=num_heads)
    out = jax.block_until_ready(out)
    assert out.shape == (B, L, embed_dim)

    ref = linformer_ref(x, wq, wk, wv, proj_k, proj_v, wo, num_heads=num_heads)
    out_f32 = out.astype(jnp.float32)
    # bf16 matmul operands / bf16 output + approx reciprocal -> bf16 tolerance.
    max_diff = jnp.max(jnp.abs(out_f32 - ref))
    assert jnp.allclose(out_f32, ref, atol=2e-2, rtol=2e-2), f"max abs diff = {max_diff}"

    print("KERNEL_OK")
</pallas_src>

<mosaic_0001>
module attributes {stable_mosaic.version = 11 : i64} {
  func.func @linformer_kernel(%arg0: i32, %arg1: i32, %arg2: memref<1x256x256xbf16, #tpu.memory_space<vmem>>, %arg3: memref<256x256xbf16, #tpu.memory_space<vmem>>, %arg4: memref<256x256xbf16, #tpu.memory_space<vmem>>, %arg5: memref<256x256xbf16, #tpu.memory_space<vmem>>, %arg6: memref<256x256xbf16, #tpu.memory_space<vmem>>, %arg7: memref<256x256xbf16, #tpu.memory_space<vmem>>, %arg8: memref<1x128x256xbf16, #tpu.memory_space<vmem>>, %arg9: memref<128x256xbf16, #tpu.memory_space<vmem>>, %arg10: memref<128x256xbf16, #tpu.memory_space<vmem>>) attributes {dimension_semantics = [#tpu.dimension_semantics<parallel>, #tpu.dimension_semantics<arbitrary>], iteration_bounds = array<i64: 2, 2>, scalar_prefetch = 0 : i64, scratch_operands = 2 : i64, tpu.core_type = #tpu.core_type<tc>, window_params = [{transform_indices = @transform_0, window_bounds = array<i64: 1, 256, 256>}, {pipeline_mode = #tpu.pipeline_mode<synchronous>, transform_indices = @transform_1, window_bounds = array<i64: 256, 256>}, {pipeline_mode = #tpu.pipeline_mode<synchronous>, transform_indices = @transform_2, window_bounds = array<i64: 256, 256>}, {pipeline_mode = #tpu.pipeline_mode<synchronous>, transform_indices = @transform_3, window_bounds = array<i64: 256, 256>}, {pipeline_mode = #tpu.pipeline_mode<synchronous>, transform_indices = @transform_4, window_bounds = array<i64: 256, 256>}, {pipeline_mode = #tpu.pipeline_mode<synchronous>, transform_indices = @transform_5, window_bounds = array<i64: 256, 256>}, {transform_indices = @transform_6, window_bounds = array<i64: 1, 128, 256>}]} {
    %c0_i32 = arith.constant 0 : i32
    %0 = arith.cmpi eq, %arg1, %c0_i32 : i32
    %1 = arith.extui %0 : i1 to i32
    %c0_i32_0 = arith.constant 0 : i32
    %2 = arith.cmpi ne, %1, %c0_i32_0 : i32
    scf.if %2 {
      %c0_24 = arith.constant 0 : index
      %c0_25 = arith.constant 0 : index
      %59 = vector.load %arg6[%c0_24, %c0_25] : memref<256x256xbf16, #tpu.memory_space<vmem>>, vector<256x256xbf16>
      %c0_26 = arith.constant 0 : index
      %c0_27 = arith.constant 0 : index
      %c0_28 = arith.constant 0 : index
      %60 = vector.load %arg2[%c0_26, %c0_27, %c0_28] : memref<1x256x256xbf16, #tpu.memory_space<vmem>>, vector<1x256x256xbf16>
      %61 = vector.shape_cast %60 : vector<1x256x256xbf16> to vector<256x256xbf16>
      %cst_29 = arith.constant dense<0.000000e+00> : vector<256x256xf32>
      %62 = tpu.matmul %59, %61, %cst_29 {dimension_numbers = #tpu.dot_dimension_numbers<[1], [0], [0], [1], [0, 0, 1, 1], [], []>} : vector<256x256xbf16>, vector<256x256xbf16>, vector<256x256xf32> -> vector<256x256xf32>
      %63 = arith.truncf %62 : vector<256x256xf32> to vector<256x256xbf16>
      %64 = vector.extract_strided_slice %63 {offsets = [0, 0], sizes = [128, 256], strides = [1, 1]} : vector<256x256xbf16> to vector<128x256xbf16>
      %c0_30 = arith.constant 0 : index
      %c0_31 = arith.constant 0 : index
      %65 = vector.load %arg4[%c0_30, %c0_31] : memref<256x256xbf16, #tpu.memory_space<vmem>>, vector<256x256xbf16>
      %cst_32 = arith.constant dense<0.000000e+00> : vector<128x256xf32>
      %66 = tpu.matmul %64, %65, %cst_32 {dimension_numbers = #tpu.dot_dimension_numbers<[1], [0], [0], [1], [0, 0, 1, 1], [], []>} : vector<128x256xbf16>, vector<256x256xbf16>, vector<128x256xf32> -> vector<128x256xf32>
      %67 = arith.truncf %66 : vector<128x256xf32> to vector<128x256xbf16>
      %c0_33 = arith.constant 0 : index
      %c0_34 = arith.constant 0 : index
      %68 = vector.load %arg9[%c0_33, %c0_34] : memref<128x256xbf16, #tpu.memory_space<vmem>>, vector<128x256xbf16>
      tpu.vector_store %arg9[%c0_33, %c0_34], %67 {strides = array<i32>} : memref<128x256xbf16, #tpu.memory_space<vmem>>, vector<128x256xbf16>,
      %69 = vector.extract_strided_slice %63 {offsets = [128, 0], sizes = [128, 256], strides = [1, 1]} : vector<256x256xbf16> to vector<128x256xbf16>
      %c0_35 = arith.constant 0 : index
      %c0_36 = arith.constant 0 : index
      %70 = vector.load %arg5[%c0_35, %c0_36] : memref<256x256xbf16, #tpu.memory_space<vmem>>, vector<256x256xbf16>
      %cst_37 = arith.constant dense<0.000000e+00> : vector<128x256xf32>
      %71 = tpu.matmul %69, %70, %cst_37 {dimension_numbers = #tpu.dot_dimension_numbers<[1], [0], [0], [1], [0, 0, 1, 1], [], []>} : vector<128x256xbf16>, vector<256x256xbf16>, vector<128x256xf32> -> vector<128x256xf32>
      %72 = arith.truncf %71 : vector<128x256xf32> to vector<128x256xbf16>
      %c0_38 = arith.constant 0 : index
      %c0_39 = arith.constant 0 : index
      %73 = vector.load %arg10[%c0_38, %c0_39] : memref<128x256xbf16, #tpu.memory_space<vmem>>, vector<128x256xbf16>
      tpu.vector_store %arg10[%c0_38, %c0_39], %72 {strides = array<i32>} : memref<128x256xbf16, #tpu.memory_space<vmem>>, vector<128x256xbf16>,
    } else {
    }
    %c128_i32 = arith.constant 128 : i32
    %3 = arith.muli %arg1, %c128_i32 : i32
    %4 = tpu.assume_multiple %3, 128 : i32
    %c0 = arith.constant 0 : index
    %5 = arith.index_cast %4 : i32 to index
    %c0_1 = arith.constant 0 : index
    %6 = vector.load %arg2[%c0, %5, %c0_1] : memref<1x256x256xbf16, #tpu.memory_space<vmem>>, vector<1x128x256xbf16>
    %7 = vector.shape_cast %6 : vector<1x128x256xbf16> to vector<128x256xbf16>
    %c0_2 = arith.constant 0 : index
    %c0_3 = arith.constant 0 : index
    %8 = vector.load %arg3[%c0_2, %c0_3] : memref<256x256xbf16, #tpu.memory_space<vmem>>, vector<256x256xbf16>
    %cst = arith.constant dense<0.000000e+00> : vector<128x256xf32>
    %9 = tpu.matmul %7, %8, %cst {dimension_numbers = #tpu.dot_dimension_numbers<[1], [0], [0], [1], [0, 0, 1, 1], [], []>} : vector<128x256xbf16>, vector<256x256xbf16>, vector<128x256xf32> -> vector<128x256xf32>
    %10 = arith.truncf %9 : vector<128x256xf32> to vector<128x256xbf16>
    %c0_4 = arith.constant 0 : index
    %c0_5 = arith.constant 0 : index
    %11 = vector.load %arg9[%c0_4, %c0_5] : memref<128x256xbf16, #tpu.memory_space<vmem>>, vector<128x256xbf16>
    %c0_6 = arith.constant 0 : index
    %c0_7 = arith.constant 0 : index
    %12 = vector.load %arg10[%c0_6, %c0_7] : memref<128x256xbf16, #tpu.memory_space<vmem>>, vector<128x256xbf16>
    %c0_8 = arith.constant 0 : index
    %c0_9 = arith.constant 0 : index
    %13 = vector.load %arg7[%c0_8, %c0_9] : memref<256x256xbf16, #tpu.memory_space<vmem>>, vector<256x256xbf16>
    %cst_10 = arith.constant 0.000000e+00 : f32
    %14 = vector.broadcast %cst_10 : f32 to vector<128x256xf32>
    %15 = vector.extract_strided_slice %10 {offsets = [0, 0], sizes = [128, 128], strides = [1, 1]} : vector<128x256xbf16> to vector<128x128xbf16>
    %16 = vector.extract_strided_slice %11 {offsets = [0, 0], sizes = [128, 128], strides = [1, 1]} : vector<128x256xbf16> to vector<128x128xbf16>
    "tpu.trace_start"() <{level = 10 : i32, message = "ld,kd->lk"}> : () -> ()
    %cst_11 = arith.constant dense<0.000000e+00> : vector<128x128xf32>
    %17 = tpu.matmul %15, %16, %cst_11 {dimension_numbers = #tpu.dot_dimension_numbers<[1], [1], [0], [0], [0, 0, 1, 0], [], []>} : vector<128x128xbf16>, vector<128x128xbf16>, vector<128x128xf32> -> vector<128x128xf32>
    "tpu.trace_stop"() : () -> ()
    %cst_12 = arith.constant dense<0xFF800000> : vector<128xf32>
    %18 = vector.multi_reduction <maximumf>, %17, %cst_12 [1] : vector<128x128xf32> to vector<128xf32>
    %19 = vector.shape_cast %18 : vector<128xf32> to vector<128x1xf32>
    %20 = vector.broadcast %19 : vector<128x1xf32> to vector<128x128xf32>
    %21 = arith.subf %17, %20 : vector<128x128xf32>
    %22 = math.exp %21 : vector<128x128xf32>
    %cst_13 = arith.constant dense<0.000000e+00> : vector<128xf32>
    %23 = vector.multi_reduction <add>, %22, %cst_13 [1] : vector<128x128xf32> to vector<128xf32>
    %24 = vector.shape_cast %23 : vector<128xf32> to vector<128x1xf32>
    %25 = tpu.reciprocal %24 {approx = true} : vector<128x1xf32> -> vector<128x1xf32>
    %26 = vector.broadcast %25 : vector<128x1xf32> to vector<128x128xf32>
    %27 = arith.mulf %22, %26 : vector<128x128xf32>
    %28 = arith.truncf %27 : vector<128x128xf32> to vector<128x128xbf16>
    %29 = vector.extract_strided_slice %12 {offsets = [0, 0], sizes = [128, 128], strides = [1, 1]} : vector<128x256xbf16> to vector<128x128xbf16>
    %cst_14 = arith.constant dense<0.000000e+00> : vector<128x128xf32>
    %30 = tpu.matmul %28, %29, %cst_14 {dimension_numbers = #tpu.dot_dimension_numbers<[1], [0], [0], [1], [0, 0, 1, 1], [], []>} : vector<128x128xbf16>, vector<128x128xbf16>, vector<128x128xf32> -> vector<128x128xf32>
    %31 = arith.truncf %30 : vector<128x128xf32> to vector<128x128xbf16>
    %32 = vector.extract_strided_slice %13 {offsets = [0, 0], sizes = [128, 256], strides = [1, 1]} : vector<256x256xbf16> to vector<128x256xbf16>
    %cst_15 = arith.constant dense<0.000000e+00> : vector<128x256xf32>
    %33 = tpu.matmul %31, %32, %cst_15 {dimension_numbers = #tpu.dot_dimension_numbers<[1], [0], [0], [1], [0, 0, 1, 1], [], []>} : vector<128x128xbf16>, vector<128x256xbf16>, vector<128x256xf32> -> vector<128x256xf32>
    %34 = arith.addf %14, %33 : vector<128x256xf32>
    %35 = vector.extract_strided_slice %10 {offsets = [0, 128], sizes = [128, 128], strides = [1, 1]} : vector<128x256xbf16> to vector<128x128xbf16>
    %36 = vector.extract_strided_slice %11 {offsets = [0, 128], sizes = [128, 128], strides = [1, 1]} : vector<128x256xbf16> to vector<128x128xbf16>
    "tpu.trace_start"() <{level = 10 : i32, message = "ld,kd->lk"}> : () -> ()
    %cst_16 = arith.constant dense<0.000000e+00> : vector<128x128xf32>
    %37 = tpu.matmul %35, %36, %cst_16 {dimension_numbers = #tpu.dot_dimension_numbers<[1], [1], [0], [0], [0, 0, 1, 0], [], []>} : vector<128x128xbf16>, vector<128x128xbf16>, vector<128x128xf32> -> vector<128x128xf32>
    "tpu.trace_stop"() : () -> ()
    %cst_17 = arith.constant dense<0xFF800000> : vector<128xf32>
    %38 = vector.multi_reduction <maximumf>, %37, %cst_17 [1] : vector<128x128xf32> to vector<128xf32>
    %39 = vector.shape_cast %38 : vector<128xf32> to vector<128x1xf32>
    %40 = vector.broadcast %39 : vector<128x1xf32> to vector<128x128xf32>
    %41 = arith.subf %37, %40 : vector<128x128xf32>
    %42 = math.exp %41 : vector<128x128xf32>
    %cst_18 = arith.constant dense<0.000000e+00> : vector<128xf32>
    %43 = vector.multi_reduction <add>, %42, %cst_18 [1] : vector<128x128xf32> to vector<128xf32>
    %44 = vector.shape_cast %43 : vector<128xf32> to vector<128x1xf32>
    %45 = tpu.reciprocal %44 {approx = true} : vector<128x1xf32> -> vector<128x1xf32>
    %46 = vector.broadcast %45 : vector<128x1xf32> to vector<128x128xf32>
    %47 = arith.mulf %42, %46 : vector<128x128xf32>
    %48 = arith.truncf %47 : vector<128x128xf32> to vector<128x128xbf16>
    %49 = vector.extract_strided_slice %12 {offsets = [0, 128], sizes = [128, 128], strides = [1, 1]} : vector<128x256xbf16> to vector<128x128xbf16>
    %cst_19 = arith.constant dense<0.000000e+00> : vector<128x128xf32>
    %50 = tpu.matmul %48, %49, %cst_19 {dimension_numbers = #tpu.dot_dimension_numbers<[1], [0], [0], [1], [0, 0, 1, 1], [], []>} : vector<128x128xbf16>, vector<128x128xbf16>, vector<128x128xf32> -> vector<128x128xf32>
    %51 = arith.truncf %50 : vector<128x128xf32> to vector<128x128xbf16>
    %52 = vector.extract_strided_slice %13 {offsets = [128, 0], sizes = [128, 256], strides = [1, 1]} : vector<256x256xbf16> to vector<128x256xbf16>
    %cst_20 = arith.constant dense<0.000000e+00> : vector<128x256xf32>
    %53 = tpu.matmul %51, %52, %cst_20 {dimension_numbers = #tpu.dot_dimension_numbers<[1], [0], [0], [1], [0, 0, 1, 1], [], []>} : vector<128x128xbf16>, vector<128x256xbf16>, vector<128x256xf32> -> vector<128x256xf32>
    %54 = arith.addf %34, %53 : vector<128x256xf32>
    %55 = arith.truncf %54 : vector<128x256xf32> to vector<128x256xbf16>
    %c0_21 = arith.constant 0 : index
    %c0_22 = arith.constant 0 : index
    %c0_23 = arith.constant 0 : index
    %56 = vector.load %arg8[%c0_21, %c0_22, %c0_23] : memref<1x128x256xbf16, #tpu.memory_space<vmem>>, vector<1x128x256xbf16>
    %57 = vector.shape_cast %56 : vector<1x128x256xbf16> to vector<128x256xbf16>
    %58 = vector.shape_cast %55 : vector<128x256xbf16> to vector<1x128x256xbf16>
    tpu.vector_store %arg8[%c0_21, %c0_22, %c0_23], %58 {strides = array<i32>} : memref<1x128x256xbf16, #tpu.memory_space<vmem>>, vector<1x128x256xbf16>,
    return
  }
  func.func @transform_0(%arg0: i32, %arg1: i32) -> (i32, i32, i32) {
    %c0_i32 = arith.constant 0 : i32
    %c0_i32_0 = arith.constant 0 : i32
    %c0_i32_1 = arith.constant 0 : i32
    return %arg0, %c0_i32, %c0_i32_0 : i32, i32, i32
  }
  func.func @transform_1(%arg0: i32, %arg1: i32) -> (i32, i32) {
    %c0_i32 = arith.constant 0 : i32
    %c0_i32_0 = arith.constant 0 : i32
    %c0_i32_1 = arith.constant 0 : i32
    return %c0_i32, %c0_i32_0 : i32, i32
  }
  func.func @transform_2(%arg0: i32, %arg1: i32) -> (i32, i32) {
    %c0_i32 = arith.constant 0 : i32
    %c0_i32_0 = arith.constant 0 : i32
    %c0_i32_1 = arith.constant 0 : i32
    return %c0_i32, %c0_i32_0 : i32, i32
  }
  func.func @transform_3(%arg0: i32, %arg1: i32) -> (i32, i32) {
    %c0_i32 = arith.constant 0 : i32
    %c0_i32_0 = arith.constant 0 : i32
    %c0_i32_1 = arith.constant 0 : i32
    return %c0_i32, %c0_i32_0 : i32, i32
  }
  func.func @transform_4(%arg0: i32, %arg1: i32) -> (i32, i32) {
    %c0_i32 = arith.constant 0 : i32
    %c0_i32_0 = arith.constant 0 : i32
    %c0_i32_1 = arith.constant 0 : i32
    return %c0_i32, %c0_i32_0 : i32, i32
  }
  func.func @transform_5(%arg0: i32, %arg1: i32) -> (i32, i32) {
    %c0_i32 = arith.constant 0 : i32
    %c0_i32_0 = arith.constant 0 : i32
    %c0_i32_1 = arith.constant 0 : i32
    return %c0_i32, %c0_i32_0 : i32, i32
  }
  func.func @transform_6(%arg0: i32, %arg1: i32) -> (i32, i32, i32) {
    %c0_i32 = arith.constant 0 : i32
    %c0_i32_0 = arith.constant 0 : i32
    return %arg0, %arg1, %c0_i32 : i32, i32, i32
  }
}

</mosaic_0001>

<bundles_post_ra>
// kernel: tpu_custom_call.1
= control target key start
LH: loop header
LB: loop body
LE: loop exit
PB: predicated region body
PF: predicated region fallthrough
CT: control target
= control target key end

     0   :  { %s5771_s0 = inlined_call_operand.hbm [shape: bf16[2,256,256], index: 0, kind: input, shape index: {}]   ;;  %s5772_s1 = inlined_call_operand.hbm [shape: bf16[256,256], index: 1, kind: input, shape index: {}]   ;;  %s5773_s2 = inlined_call_operand.hbm [shape: bf16[256,256], index: 2, kind: input, shape index: {}]   ;;  %s5774_s3 = inlined_call_operand.hbm [shape: bf16[256,256], index: 3, kind: input, shape index: {}]   ;;  %s5775_s4 = inlined_call_operand.hbm [shape: bf16[256,256], index: 4, kind: input, shape index: {}]   ;;  %s5776_s5 = inlined_call_operand.hbm [shape: bf16[256,256], index: 5, kind: input, shape index: {}]   ;;  %s5777_s6 = inlined_call_operand.hbm [shape: bf16[2,256,256], index: 6, kind: output, shape index: {}]  }
   0x1   :  { %5789 = sst [smem:[#allocation25_spill]] %s5771_s0 }
   0x2   :  { %5790 = sst [smem:[#allocation26_spill]] %s5772_s1 }
   0x3   :  { %5791 = sst [smem:[#allocation27_spill]] %s5773_s2 }
   0x4   :  { %5792 = sst [smem:[#allocation28_spill]] %s5774_s3 }
   0x5   :  { %5793 = sst [smem:[#allocation29_spill]] %s5775_s4 }
   0x6   :  { %5794 = sst [smem:[#allocation30_spill]] %s5777_s6 }
   0x7   :  { %11 = vsyncpa [#allocation5], 0 }
   0x8   :  { %13 = vsyncpa [#allocation5 + $0x1], 0 }
   0x9   :  { %14 = vsyncpa [#allocation8], 0 }
   0xa   :  { %15 = vsyncpa [#allocation11], 0 }
   0xb   :  { %16 = vsyncpa [#allocation14], 0 }
   0xc   :  { %17 = vsyncpa [#allocation6], 0 }
   0xd   :  { %19 = vsyncpa [#allocation6 + $0x1], 0  ;;  %s4942_s21 = smov 0   ;;  %s4944_s22 = smov 0  }
   0xe   :  { %s4946_s23 = smov 0   ;;  %s4948_s24 = smov 0  }
   0xf   :  { %s4950_s25 = smov 0   ;;  %s4952_s26 = smov 0  }
  0x10   :  { %s4954_s27 = smov 0   ;;  %s4956_s28 = smov 0  }
  0x11   :  { %s4958_s29 = smov 0   ;;  %s4960_s30 = smov 0  }
  0x12   :  { %s4962_s7 = smov 0  }
  0x13 LB: > { %5795 = sst [smem:[#allocation21_spill]] %s4877_s27  ;;  %s3493_s8 = sadd.s32 4294967295, %s4893_s7   ;;  %s4893_s7 = sphi %s4962_s7, %s25_s7   ;;  %s4889_s30 = sphi %s4960_s30, %s5837_s30   ;;  %s4885_s29 = sphi %s4958_s29, %s5836_s29   ;;  %s4881_s28 = sphi %s4956_s28, %s5835_s28   ;;  %s4877_s27 = sphi %s4954_s27, %s5834_s27   ;;  %s4873_s26 = sphi %s4952_s26, %s5833_s26   ;;  %s4869_s25 = sphi %s4950_s25, %s5832_s25   ;;  %s4865_s24 = sphi %s4948_s24, %s5831_s24   ;;  %s4861_s23 = sphi %s4946_s23, %s5830_s23   ;;  %s4857_s22 = sphi %s4944_s22, %s5829_s22   ;;  %s4853_s21 = sphi %s4942_s21, %s5828_s21  }
  0x14   : > { %5796 = sst [smem:[#allocation22_spill]] %s4881_s28  ;;  %p3495_p0 = scmp.ge.s32.totalorder %s4893_s7, 1 }
  0x15   : > { %p4999_p1 = scmp.eq.s32.totalorder %s3493_s8, 0  ;;  %p5003_p2 = scmp.eq.s32.totalorder %s3493_s8, 3 }
  0x16   : > { %p201_p3 = scmp.lt.s32.totalorder %s4893_s7, 5  ;;  %s4895_s12 = smov [#allocation7]  }
  0x17   : > { %s5797_s9 = scalar_select %p4999_p1, 1, 0 }
  0x18   : > { %s5798_s10 = scalar_select %p5003_p2, 1, 0 }
  0x19   : > { %p5008_p4 = pnand %p3495_p0, %p201_p3  ;;  %s213_s13 = sshll.u32 %s4895_s12, 4  ;;  %s5012_s13 = int_to_ptr.vmem [resolvable:$true] %s213_s13 }
  0x1a   : > { %5799 = sst [smem:[#allocation23_spill]] %s5798_s10  ;;  %s4896_s15 = smov [#allocation10]  }
  0x1b   : > { %s5800_s11 = scalar_select %p5008_p4, 1, 0 }
  0x1c   : > { %p4015_p5 = pneg %p5008_p4  ;;  %s239_s16 = sshll.u32 %s4896_s15, 4  ;;  %s5022_s16 = int_to_ptr.vmem [resolvable:$true] %s239_s16 }
  0x1d   : > { %5801 = sst [smem:[#allocation24_spill]] %s5800_s11  ;;  %s4897_s17 = smov [#allocation9]  }
  0x1e   : > { %p5018_p6 = pnand %p4015_p5, %p4999_p1  ;;  %s226_s18 = sshll.u32 %s4897_s17, 4  ;;  %s5024_s18 = int_to_ptr.vmem [resolvable:$true] %s226_s18 }
  0x1f   : > { %s5803_s1 = sld [smem:[#allocation26_spill]] }
  0x20   : > { %p5034_p8 = pneg %p5018_p6 }
  0x25   : > { %s4589_s8 = scalar_lea.hbm %s5803_s1, 4096 }
  0x26   : > { %p4590_p7 = scmp.ne.s32.totalorder %s5803_s1, %s4589_s8  ;;  %p4596_p11 = scmp.lt.u32.totalorder %s4589_s8, %s5803_s1 }
  0x28   : > { %p4592_p9 = pnand %p5034_p8, %p4590_p7 }
  0x2a   : > { %p4593_p10 = pneg %p4592_p9 }
  0x2c   : > { %p4598_p12 = pnand %p4596_p11, %p4593_p10 }
  0x2e   : > { %4601 = shalt.err (!%p4598_p12)
}
  0x2f   : > { %s4602_s6 = scalar_lea.vmem %s5012_s13, 4096  ;;  %p4610_p5 = scmp.lt.s32.totalorder %s5012_s13, %s5012_s13 }
  0x30   : > { %p4603_p13 = scmp.ne.s32.totalorder %s5012_s13, %s4602_s6  ;;  %p4611_p4 = scmp.lt.s32.totalorder %s4602_s6, %s4602_s6 }
  0x32   : > { %p4605_p0 = pnand %p4603_p13, %p5034_p8  ;;  %p4612_p7 = por %p4611_p4, %p4610_p5 }
  0x34   : > { %p4606_p3 = pneg %p4605_p0 }
  0x36   : > { %p4613_p9 = pnand %p4612_p7, %p4606_p3 }
  0x38   : > { %4616 = shalt.err (!%p4613_p9)
}
  0x39   : > { %s5786_s19 = smov 128   ;;  %s5787_s20 = smov 8  }
  0x3a   : > { %4018 = dma.hbm_to_vmem [thread:$0]  (!%p5018_p6), %s5803_s1, 4096, %s5012_s13, [#allocation8], %s5786_s19, %s5786_s19, %s5787_s20  }
  0x3b   : > { %s5805_s3 = sld [smem:[#allocation28_spill]] }
  0x41   : > { %s4617_s6 = scalar_lea.hbm %s5805_s3, 4096 }
  0x42   : > { %p4618_p4 = scmp.ne.s32.totalorder %s5805_s3, %s4617_s6  ;;  %p4624_p12 = scmp.lt.u32.totalorder %s4617_s6, %s5805_s3 }
  0x44   : > { %p4620_p10 = pnand %p4618_p4, %p5034_p8 }
  0x46   : > { %p4621_p11 = pneg %p4620_p10 }
  0x48   : > { %p4626_p13 = pnand %p4624_p12, %p4621_p11 }
  0x4a   : > { %4629 = shalt.err (!%p4626_p13)
}
  0x4b   : > { %s4630_s13 = scalar_lea.vmem %s5022_s16, 4096  ;;  %p4638_p7 = scmp.lt.s32.totalorder %s5022_s16, %s5022_s16 }
  0x4c   : > { %p4631_p0 = scmp.ne.s32.totalorder %s5022_s16, %s4630_s13  ;;  %p4639_p9 = scmp.lt.s32.totalorder %s4630_s13, %s4630_s13 }
  0x4e   : > { %p4633_p3 = pnand %p4631_p0, %p5034_p8  ;;  %p4640_p4 = por %p4639_p9, %p4638_p7 }
  0x50   : > { %p4634_p5 = pneg %p4633_p3 }
  0x52   : > { %p4641_p10 = pnand %p4640_p4, %p4634_p5 }
  0x54   : > { %4644 = shalt.err (!%p4641_p10)
}
  0x55   : > { %4024 = dma.hbm_to_vmem [thread:$0]  (!%p5018_p6), %s5805_s3, 4096, %s5022_s16, [#allocation11], %s5786_s19, %s5786_s19, %s5787_s20  }
  0x56   : > { %s5806_s2 = sld [smem:[#allocation27_spill]] }
  0x5c   : > { %s4645_s8 = scalar_lea.hbm %s5806_s2, 4096 }
  0x5d   : > { %p4646_p11 = scmp.ne.s32.totalorder %s5806_s2, %s4645_s8  ;;  %p4652_p0 = scmp.lt.u32.totalorder %s4645_s8, %s5806_s2 }
  0x5f   : > { %p4648_p12 = pnand %p4646_p11, %p5034_p8 }
  0x61   : > { %p4649_p13 = pneg %p4648_p12 }
  0x63   : > { %p4654_p3 = pnand %p4652_p0, %p4649_p13 }
  0x65   : > { %4657 = shalt.err (!%p4654_p3)
}
  0x66   : > { %s4658_s16 = scalar_lea.vmem %s5024_s18, 4096  ;;  %p4666_p4 = scmp.lt.s32.totalorder %s5024_s18, %s5024_s18 }
  0x67   : > { %p4659_p5 = scmp.ne.s32.totalorder %s5024_s18, %s4658_s16  ;;  %p4667_p10 = scmp.lt.s32.totalorder %s4658_s16, %s4658_s16 }
  0x69   : > { %p4661_p7 = pnand %p4659_p5, %p5034_p8  ;;  %p4668_p11 = por %p4667_p10, %p4666_p4 }
  0x6b   : > { %p4662_p9 = pneg %p4661_p7 }
  0x6d   : > { %p4669_p12 = pnand %p4668_p11, %p4662_p9 }
  0x6f   : > { %4672 = shalt.err (!%p4669_p12)
}
  0x70   : > { %4021 = dma.hbm_to_vmem [thread:$0]  (!%p5018_p6), %s5806_s2, 4096, %s5024_s18, [#allocation8], %s5786_s19, %s5786_s19, %s5787_s20  }
  0x71   : > { %s4900_s27 = smov [#allocation12]   ;;  %s4901_s11 = smov [#allocation13]  }
  0x72   : > { %s252_s10 = sshll.u32 %s4900_s27, 4  ;;  %s265_s8 = sshll.u32 %s4901_s11, 4  ;;  %s253_s10 = int_to_ptr.vmem [resolvable:$true] %s252_s10  ;;  %s5110_s8 = int_to_ptr.vmem [resolvable:$true] %s265_s8 }
  0x73   : > { %s5807_s4 = sld [smem:[#allocation29_spill]] }
  0x79   : > { %s4673_s17 = scalar_lea.hbm %s5807_s4, 4096 }
  0x7a   : > { %p4674_p13 = scmp.ne.s32.totalorder %s5807_s4, %s4673_s17  ;;  %p4680_p5 = scmp.lt.u32.totalorder %s4673_s17, %s5807_s4 }
  0x7c   : > { %p4676_p0 = pnand %p4674_p13, %p5034_p8 }
  0x7e   : > { %p4677_p3 = pneg %p4676_p0 }
  0x80   : > { %p4682_p7 = pnand %p4680_p5, %p4677_p3 }
  0x82   : > { %4685 = shalt.err (!%p4682_p7)
}
  0x83   : > { %s4686_s0 = scalar_lea.vmem %s253_s10, 4096  ;;  %p4694_p11 = scmp.lt.s32.totalorder %s253_s10, %s253_s10 }
  0x84   : > { %p4687_p9 = scmp.ne.s32.totalorder %s253_s10, %s4686_s0  ;;  %p4695_p12 = scmp.lt.s32.totalorder %s4686_s0, %s4686_s0 }
  0x86   : > { %p4689_p4 = pnand %p4687_p9, %p5034_p8  ;;  %p4696_p2 = por %p4695_p12, %p4694_p11 }
  0x88   : > { %p4690_p10 = pneg %p4689_p4 }
  0x8a   : > { %p4697_p1 = pnand %p4696_p2, %p4690_p10 }
  0x8c   : > { %4700 = shalt.err (!%p4697_p1)
}
  0x8d   : > { %4027 = dma.hbm_to_vmem [thread:$0]  (!%p5018_p6), %s5807_s4, 4096, %s253_s10, [#allocation11], %s5786_s19, %s5786_s19, %s5787_s20  }
  0x8e   : > { %s4701_s17 = scalar_lea.hbm %s5776_s5, 4096 }
  0x8f   : > { %p4702_p13 = scmp.ne.s32.totalorder %s5776_s5, %s4701_s17  ;;  %p4708_p0 = scmp.lt.u32.totalorder %s4701_s17, %s5776_s5 }
  0x91   : > { %p4704_p1 = pnand %p4702_p13, %p5034_p8 }
  0x93   : > { %p4705_p2 = pneg %p4704_p1 }
  0x95   : > { %p4710_p3 = pnand %p4708_p0, %p4705_p2 }
  0x97   : > { %4713 = shalt.err (!%p4710_p3)
}
  0x98   : > { %s4714_s10 = scalar_lea.vmem %s5110_s8, 4096  ;;  %p4722_p4 = scmp.lt.s32.totalorder %s5110_s8, %s5110_s8 }
  0x99   : > { %p4715_p5 = scmp.ne.s32.totalorder %s5110_s8, %s4714_s10  ;;  %p4723_p10 = scmp.lt.s32.totalorder %s4714_s10, %s4714_s10 }
  0x9b   : > { %p4717_p7 = pnand %p4715_p5, %p5034_p8  ;;  %p4724_p11 = por %p4723_p10, %p4722_p4 }
  0x9d   : > { %p4718_p9 = pneg %p4717_p7 }
  0x9f   : > { %p4725_p12 = pnand %p4724_p11, %p4718_p9 }
  0xa1   : > { %4728 = shalt.err (!%p4725_p12)
}
  0xa2   : > { %4030 = dma.hbm_to_vmem [thread:$0]  (!%p5018_p6), %s5776_s5, 4096, %s5110_s8, [#allocation14], %s5786_s19, %s5786_s19, %s5787_s20  }
  0xa3   : > { %s3494_s28 = sadd.s32 4294967294, %s4893_s7   ;;  %s34_s14 = sadd.s32 1, %s4885_s29 }
  0xa4   : > { %p35_p8 = scmp.ge.s32.totalorder %s34_s14, 2  ;;  %s37_s11 = sadd.s32 1, %s4889_s30 }
  0xa5   : > { %s44_s12 = sadd.s32 1, %s4873_s26  ;;  %p51_p13 = scmp.ne.s32.totalorder %s4873_s26, %s4869_s25 }
  0xa6   : > { %s5839_s14 = smov (%p35_p8, %s34_s14), 0  ;;  %s5808_s15 = sld [smem:[#allocation23_spill]] }
  0xa7   : > { %s5841_s11 = smov (!%p35_p8, %s37_s11), %s4889_s30  ;;  %p52_p1 = scmp.eq.s32.totalorder %s4893_s7, 0 }
  0xa8   : > { %p57_p6 = scmp.ne.s32.totalorder %s4869_s25, %s4865_s24  ;;  %p39_p2 = scmp.ge.s32.totalorder %s5841_s11, 2 }
  0xa9   : > { %s173_s8 = ssub.s32 %s4885_s29, %s5839_s14  ;;  %p5173_p0 = por %p52_p1, %p51_p13 }
  0xaa   : > { %p5810_p3 = scmp.ne.s32.totalorder %s5797_s9, 0  ;;  %s5843_s11 = smov (%p39_p2, %s5841_s11), 0 }
  0xab   : > { %s177_s16 = sadd.s32 1, %s4861_s23  ;;  %p187_p7 = scmp.ne.s32.totalorder %s4861_s23, %s4857_s22 }
  0xac   : > { %p5179_p5 = por %p5810_p3, %p57_p6  ;;  %s41_s24 = ssub.s32 %s4889_s30, %s5843_s11 }
  0xad   : > { %p193_p9 = scmp.ne.s32.totalorder %s4857_s22, %s4853_s21  ;;  %p42_p4 = scmp.eq.s32.totalorder %s41_s24, 0 }
  0xae   : > { %s174_s13 = sor.u32 %s173_s8, %s41_s24  ;;  %p5812_p11 = scmp.ne.s32.totalorder %s5808_s15, 0 }
  0xaf   : > { %p175_p10 = scmp.eq.s32.totalorder %s174_s13, 0  ;;  %p194_p8 = scmp.eq.s32.totalorder %s3494_s28, 3 }
  0xb0   : > { %p5194_p12 = por %p5812_p11, %p187_p7  ;;  %p4044_p13 = scmp.lt.s32.totalorder %s4893_s7, 4 }
  0xb1   : > { %s5199_s10 = scalar_select %p42_p4, %s4873_s26, %s44_s12  }
  0xb2   : > { %s5813_s18 = scalar_select %p5194_p12, 1, 0 }
  0xb3   : > { %s5202_s0 = scalar_select %p175_p10, %s4861_s23, %s177_s16  }
  0xb4   : > { %s279_s27 = sand.u32 1, %s4873_s26   ;;  %s3748_s19 = sshll.u32 %s4889_s30, 12 }
  0xb5   : > { %p5207_p1 = por %p194_p8, %p193_p9  ;;  %s3502_s1 = sshll.u32 %s279_s27, 8 }
  0xb6   : > { %s5815_s15 = sld [smem:[#allocation25_spill]]  ;;  %p5218_p6 = pnand %p4044_p13, %p5173_p0 }
  0xb7   : > { %s5814_s20 = scalar_select %p5207_p1, 1, 0 }
  0xb8   : > { %s283_s12 = scalar_lea.vmem [#allocation4], %s3502_s1  ;;  %s5224_s2 = scalar_lea.sflag [#allocation5], %s279_s27 }
  0xb9   : > { %s290_s16 = sshll.u32 %s283_s12, 4  ;;  %p4731_p3 = pneg %p5218_p6  ;;  %s5222_s16 = int_to_ptr.vmem [resolvable:$true] %s290_s16 }
  0xbc   : > { %s5214_s13 = scalar_lea.hbm %s5815_s15, %s3748_s19  ;;  %s4734_s24 = scalar_lea.hbm %s5815_s15, 8192 }
  0xbd   : > { %s4729_s8 = scalar_lea.hbm %s5214_s13, 4096  ;;  %p4735_p0 = scmp.lt.u32.totalorder %s5214_s13, %s5815_s15 }
  0xbe   : > { %p4730_p2 = scmp.ne.s32.totalorder %s5214_s13, %s4729_s8  ;;  %p4736_p4 = scmp.lt.u32.totalorder %s4734_s24, %s4729_s8 }
  0xbf   : > { %p4738_p11 = scmp.lt.u32.totalorder %s4729_s8, %s5214_s13 }
  0xc0   : > { %p4732_p7 = pnand %p4731_p3, %p4730_p2  ;;  %p4737_p10 = por %p4736_p4, %p4735_p0 }
  0xc2   : > { %p4733_p9 = pneg %p4732_p7  ;;  %p4739_p8 = por %p4738_p11, %p4737_p10 }
  0xc4   : > { %p4740_p13 = pnand %p4739_p8, %p4733_p9 }
  0xc6   : > { %4743 = shalt.err (!%p4740_p13)
}
  0xc7   : > { %s4744_s1 = scalar_lea.vmem %s5222_s16, 4096  ;;  %s4902_s27 = smov [#allocation4]  }
  0xc8   : > { %p4745_p2 = scmp.ne.s32.totalorder %s5222_s16, %s4744_s1  ;;  %s4749_s12 = sshll.u32 %s4902_s27, 4  ;;  %s4750_s12 = int_to_ptr.vmem [resolvable:$false] %s4749_s12 }
  0xc9   : > { %s4751_s3 = scalar_lea.vmem %s4750_s12, 8192  ;;  %p4752_p12 = scmp.lt.s32.totalorder %s5222_s16, %s4750_s12 }
  0xca   : > { %p4747_p7 = pnand %p4745_p2, %p4731_p3  ;;  %p4753_p0 = scmp.lt.s32.totalorder %s4751_s3, %s4744_s1 }
  0xcc   : > { %p4748_p1 = pneg %p4747_p7  ;;  %p4754_p4 = por %p4753_p0, %p4752_p12 }
  0xce   : > { %p4755_p10 = pnand %p4754_p4, %p4748_p1 }
  0xd0   : > { %4758 = shalt.err (!%p4755_p10)
}
  0xd1   : > { %s5817_s4 = smov 8   ;;  %s5818_s8 = smov 128  }
  0xd2   : > { %4034 = dma.hbm_to_vmem [thread:$0]  (!%p5218_p6), %s5214_s13, 4096, %s5222_s16, %s5224_s2, %s5818_s8, %s5818_s8, %s5817_s4  }
  0xd3   : > { %s5819_s19 = sld [smem:[#allocation24_spill]] }
  0xd9   : > { %p5820_p3 = scmp.ne.s32.totalorder %s5819_s19, 0 }
  0xda   : > { %s304_s17 = sand.u32 (!%p5820_p3), 1, %s4869_s25  }
  0xdb   : > { %302 = sbr.rel (%p5820_p3) target bundleno = 2309 (0x905), region = 44  ;;  %s3506_s24 = sshll.u32 (!%p5820_p3), %s304_s17, 8 }
  0xdc   : > { %s305_s1 = scalar_lea.sflag (!%p5820_p3), [#allocation5], %s304_s17  ;;  %s5258_s27 = scalar_lea.vmem (!%p5820_p3), [#allocation4], %s3506_s24 }
  0xe2   : > { %4832 = dma.done.wait (%p5179_p5), %s305_s1, 4096  }
  0xe3   : > { %4834 = vsyncadd (%p5179_p5), %s305_s1, 4294963200  ;;  %p5821_p12 = scmp.ne.s32.totalorder %s5797_s9, 0 }
  0xe5   : > { %4836 = dma.done.wait (%p5821_p12), [#allocation8], 8192  }
  0xe6   : > { %4838 = vsyncadd (%p5821_p12), [#allocation8], 4294959104 }
  0xe7   : > { %4840 = dma.done.wait (%p5821_p12), [#allocation11], 8192  }
  0xe8   : > { %4842 = vsyncadd (%p5821_p12), [#allocation11], 4294959104 }
  0xe9   : > { %4844 = dma.done.wait (%p5821_p12), [#allocation14], 4096  }
  0xea   : > { %4846 = vsyncadd (%p5821_p12), [#allocation14], 4294963200  ;;  %s354_s2 = sand.u32 1, %s4857_s22   ;;  %s5822_s28 = sld [smem:[#allocation21_spill]] }
  0xeb   : > { %s3512_s6 = sshll.u32 %s354_s2, 7 }
  0xec   : > { %s5279_s13 = scalar_lea.vmem [#allocation15], %s3512_s6 }
  0xf0   : > { %p3513_p5 = scmp.ne.s32.totalorder %s5822_s28, 0 }
  0xf1   : > { %v4149_v0 = vld [vmem:[%s5258_s27 + $0x4] ss:$8 sps:$4 sm:$0xff] (!%p3513_p5)   ;;  %v4151_v1 = vld [vmem:[%s5258_s27] ss:$8 sps:$4 sm:$0xff] (!%p3513_p5)   ;;  %v4152_v2 = vld [vmem:[%s5258_s27 + $0x14] ss:$8 sps:$4 sm:$0xff] (!%p3513_p5)  }
  0xf2   : > { %362 = sbr.rel (%p3513_p5) target bundleno = 862 (0x35e), region = 72  ;;  %747 = vmatprep.subr.bf16.mxu0 (!%p3513_p5), %v4149_v0  ;;  %v4154_v3 = vld [vmem:[%s5258_s27 + $0x10] ss:$8 sps:$4 sm:$0xff] (!%p3513_p5)   ;;  %v4155_v4 = vld [vmem:[%s5258_s27 + $0x24] ss:$8 sps:$4 sm:$0xff] (!%p3513_p5)  }
  0xf3   : > { %748 = vmatpush1.bf16.msra.mxu0 (!%p3513_p5), %v4151_v1  ;;  %v4157_v5 = vld [vmem:[%s5258_s27 + $0x20] ss:$8 sps:$4 sm:$0xff] (!%p3513_p5)   ;;  %v4158_v6 = vld [vmem:[%s5258_s27 + $0x34] ss:$8 sps:$4 sm:$0xff] (!%p3513_p5)   ;;  %v4160_v7 = vld [vmem:[%s5258_s27 + $0x30] ss:$8 sps:$4 sm:$0xff] (!%p3513_p5)  }
  0xf4   : > { %749 = vmatprep.subr.bf16.mxu0 (!%p3513_p5), %v4152_v2  ;;  %v4161_v8 = vld [vmem:[%s5258_s27 + $0x44] ss:$8 sps:$4 sm:$0xff] (!%p3513_p5)   ;;  %v4163_v9 = vld [vmem:[%s5258_s27 + $0x40] ss:$8 sps:$4 sm:$0xff] (!%p3513_p5)   ;;  %v4164_v10 = vld [vmem:[%s5258_s27 + $0x54] ss:$8 sps:$4 sm:$0xff] (!%p3513_p5)  }
  0xf5   : > { %v4166_v11 = vld [vmem:[%s5258_s27 + $0x50] ss:$8 sps:$4 sm:$0xff] (!%p3513_p5)   ;;  %v4167_v12 = vld [vmem:[%s5258_s27 + $0x64] ss:$8 sps:$4 sm:$0xff] (!%p3513_p5)   ;;  %v4169_v14 = vld [vmem:[%s5258_s27 + $0x60] ss:$8 sps:$4 sm:$0xff] (!%p3513_p5)  }
  0xf6   : > { %v4199_v13 = vld [vmem:[#allocation12 + $0x4] ss:$8 sps:$4 sm:$0xff] (!%p3513_p5)   ;;  %v4170_v15 = vld [vmem:[%s5258_s27 + $0x74] ss:$8 sps:$4 sm:$0xff] (!%p3513_p5)   ;;  %v4172_v16 = vld [vmem:[%s5258_s27 + $0x70] ss:$8 sps:$4 sm:$0xff] (!%p3513_p5)  }
  0xf7   : > { %750 = vmatpush1.bf16.msra.mxu0 (!%p3513_p5), %v4154_v3  ;;  %779 = vmatprep.mubr.bf16.mxu0 (!%p3513_p5), %v4199_v13  ;;  %v4173_v17 = vld [vmem:[%s5258_s27 + $0x84] ss:$8 sps:$4 sm:$0xff] (!%p3513_p5)   ;;  %v4175_v18 = vld [vmem:[%s5258_s27 + $0x80] ss:$8 sps:$4 sm:$0xff] (!%p3513_p5)   ;;  %v4176_v19 = vld [vmem:[%s5258_s27 + $0x94] ss:$8 sps:$4 sm:$0xff] (!%p3513_p5)  }
  0xf8   : > { %751 = vmatprep.subr.bf16.mxu0 (!%p3513_p5), %v4155_v4  ;;  %v4178_v20 = vld [vmem:[%s5258_s27 + $0x90] ss:$8 sps:$4 sm:$0xff] (!%p3513_p5)   ;;  %v4179_v21 = vld [vmem:[%s5258_s27 + $0xa4] ss:$8 sps:$4 sm:$0xff] (!%p3513_p5)   ;;  %v4181_v22 = vld [vmem:[%s5258_s27 + $0xa0] ss:$8 sps:$4 sm:$0xff] (!%p3513_p5)  }
  0xf9   : > { %v4182_v23 = vld [vmem:[%s5258_s27 + $0xb4] ss:$8 sps:$4 sm:$0xff]   ;;  %v4184_v24 = vld [vmem:[%s5258_s27 + $0xb0] ss:$8 sps:$4 sm:$0xff]   ;;  %v4185_v25 = vld [vmem:[%s5258_s27 + $0xc4] ss:$8 sps:$4 sm:$0xff]  }
  0xfa   : > { %v4187_v26 = vld [vmem:[%s5258_s27 + $0xc0] ss:$8 sps:$4 sm:$0xff]   ;;  %v4188_v27 = vld [vmem:[%s5258_s27 + $0xd4] ss:$8 sps:$4 sm:$0xff]   ;;  %v4190_v28 = vld [vmem:[%s5258_s27 + $0xd0] ss:$8 sps:$4 sm:$0xff]  }
  0xfb   : > { %752 = vmatpush1.bf16.msra.mxu0 %v4157_v5  ;;  %v4191_v29 = vld [vmem:[%s5258_s27 + $0xe4] ss:$8 sps:$4 sm:$0xff]   ;;  %v4193_v30 = vld [vmem:[%s5258_s27 + $0xe0] ss:$8 sps:$4 sm:$0xff]   ;;  %v4194_v31 = vld [vmem:[%s5258_s27 + $0xf4] ss:$8 sps:$4 sm:$0xff]  }
  0xfc   : > { %753 = vmatprep.subr.bf16.mxu0 %v4158_v6  ;;  %v4245_v32 = vld [vmem:[#allocation9 + $0x4] ss:$8 sps:$4 sm:$0xff]   ;;  %v4247_v33 = vld [vmem:[#allocation9] ss:$8 sps:$4 sm:$0xff]   ;;  %v4248_v34 = vld [vmem:[#allocation9 + $0x14] ss:$8 sps:$4 sm:$0xff]  }
  0xfd   : > { %v4196_v35 = vld [vmem:[%s5258_s27 + $0xf0] ss:$8 sps:$4 sm:$0xff]   ;;  %1164 = vmatprep.subr.bf16.mxu1 %v4245_v32  ;;  %v4197_v37 = vld [vmem:[#allocation12] ss:$8 sps:$4 sm:$0xff]   ;;  %v4251_v38 = vld [vmem:[#allocation9 + $0x24] ss:$8 sps:$4 sm:$0xff]  }
  0xfe   : > { %1165 = vmatpush1.bf16.msra.mxu1 %v4247_v33  ;;  %v4250_v36 = vld [vmem:[#allocation9 + $0x10] ss:$8 sps:$4 sm:$0xff]   ;;  %v4200_v39 = vld [vmem:[#allocation12 + $0x14] ss:$8 sps:$4 sm:$0xff]   ;;  %v4253_v40 = vld [vmem:[#allocation9 + $0x20] ss:$8 sps:$4 sm:$0xff]  }
  0xff   : > { %754 = vmatpush1.bf16.msra.mxu0 %v4160_v7  ;;  %1166 = vmatprep.subr.bf16.mxu1 %v4248_v34  ;;  %v4254_v41 = vld [vmem:[#allocation9 + $0x34] ss:$8 sps:$4 sm:$0xff]   ;;  %v4256_v42 = vld [vmem:[#allocation9 + $0x30] ss:$8 sps:$4 sm:$0xff]   ;;  %v4257_v44 = vld [vmem:[#allocation9 + $0x44] ss:$8 sps:$4 sm:$0xff]  }
 0x100   : > { %755 = vmatprep.subr.bf16.mxu0 %v4161_v8  ;;  %v4202_v43 = vld [vmem:[#allocation12 + $0x10] ss:$8 sps:$4 sm:$0xff]   ;;  %v4203_v45 = vld [vmem:[#allocation12 + $0x24] ss:$8 sps:$4 sm:$0xff]   ;;  %v4259_v46 = vld [vmem:[#allocation9 + $0x40] ss:$8 sps:$4 sm:$0xff]  }
 0x101   : > { %v4260_v47 = vld [vmem:[#allocation9 + $0x54] ss:$8 sps:$4 sm:$0xff]   ;;  %v4262_v48 = vld [vmem:[#allocation9 + $0x50] ss:$8 sps:$4 sm:$0xff]   ;;  %v4205_v49 = vld [vmem:[#allocation12 + $0x20] ss:$8 sps:$4 sm:$0xff]  }
 0x102   : > { %1167 = vmatpush1.bf16.msra.mxu1 %v4250_v36  ;;  %v4263_v50 = vld [vmem:[#allocation9 + $0x64] ss:$8 sps:$4 sm:$0xff]   ;;  %v4206_v51 = vld [vmem:[#allocation12 + $0x34] ss:$8 sps:$4 sm:$0xff]   ;;  %v4265_v52 = vld [vmem:[#allocation9 + $0x60] ss:$8 sps:$4 sm:$0xff]  }
 0x103   : > { %756 = vmatpush1.bf16.msra.mxu0 %v4163_v9  ;;  %1168 = vmatprep.subr.bf16.mxu1 %v4251_v38  ;;  %v4266_v53 = vld [vmem:[#allocation9 + $0x74] ss:$8 sps:$4 sm:$0xff]   ;;  %v4268_v54 = vld [vmem:[#allocation9 + $0x70] ss:$8 sps:$4 sm:$0xff]   ;;  %v4269_v56 = vld [vmem:[#allocation9 + $0x84] ss:$8 sps:$4 sm:$0xff]  }
 0x104   : > { %757 = vmatprep.subr.bf16.mxu0 %v4164_v10  ;;  %v4208_v55 = vld [vmem:[#allocation12 + $0x30] ss:$8 sps:$4 sm:$0xff]   ;;  %v4209_v57 = vld [vmem:[#allocation12 + $0x44] ss:$8 sps:$4 sm:$0xff]   ;;  %v4271_v58 = vld [vmem:[#allocation9 + $0x80] ss:$8 sps:$4 sm:$0xff]  }
 0x105   : > { %v4272_v59 = vld [vmem:[#allocation9 + $0x94] ss:$8 sps:$4 sm:$0xff]   ;;  %v4274_v60 = vld [vmem:[#allocation9 + $0x90] ss:$8 sps:$4 sm:$0xff]   ;;  %v4211_v61 = vld [vmem:[#allocation12 + $0x40] ss:$8 sps:$4 sm:$0xff]  }
 0x106   : > { %1169 = vmatpush1.bf16.msra.mxu1 %v4253_v40  ;;  %v4275_v62 = vld [vmem:[#allocation9 + $0xa4] ss:$8 sps:$4 sm:$0xff]   ;;  %v4212_v63 = vld [vmem:[#allocation12 + $0x54] ss:$8 sps:$4 sm:$0xff]   ;;  %v4277_v0 = vld [vmem:[#allocation9 + $0xa0] ss:$8 sps:$4 sm:$0xff]  }
 0x107   : > { %758 = vmatpush1.bf16.msra.mxu0 %v4166_v11  ;;  %1170 = vmatprep.subr.bf16.mxu1 %v4254_v41  ;;  %v4278_v1 = vld [vmem:[#allocation9 + $0xb4] ss:$8 sps:$4 sm:$0xff]   ;;  %v4280_v2 = vld [vmem:[#allocation9 + $0xb0] ss:$8 sps:$4 sm:$0xff]   ;;  %v4281_v4 = vld [vmem:[#allocation9 + $0xc4] ss:$8 sps:$4 sm:$0xff]  }
 0x108   : > { %759 = vmatprep.subr.bf16.mxu0 %v4167_v12  ;;  %v4214_v3 = vld [vmem:[#allocation12 + $0x50] ss:$8 sps:$4 sm:$0xff]   ;;  %v4215_v5 = vld [vmem:[#allocation12 + $0x64] ss:$8 sps:$4 sm:$0xff]   ;;  %v4283_v6 = vld [vmem:[#allocation9 + $0xc0] ss:$8 sps:$4 sm:$0xff]  }
 0x109   : > { %v4284_v7 = vld [vmem:[#allocation9 + $0xd4] ss:$8 sps:$4 sm:$0xff]   ;;  %v4286_v8 = vld [vmem:[#allocation9 + $0xd0] ss:$8 sps:$4 sm:$0xff]   ;;  %v4217_v9 = vld [vmem:[#allocation12 + $0x60] ss:$8 sps:$4 sm:$0xff]  }
 0x10a   : > { %1171 = vmatpush1.bf16.msra.mxu1 %v4256_v42  ;;  %v4287_v10 = vld [vmem:[#allocation9 + $0xe4] ss:$8 sps:$4 sm:$0xff]   ;;  %v4218_v11 = vld [vmem:[#allocation12 + $0x74] ss:$8 sps:$4 sm:$0xff]   ;;  %v4289_v12 = vld [vmem:[#allocation9 + $0xe0] ss:$8 sps:$4 sm:$0xff]  }
 0x10b   : > { %760 = vmatpush1.bf16.msra.mxu0 %v4169_v14  ;;  %1172 = vmatprep.subr.bf16.mxu1 %v4257_v44  ;;  %v4220_v13 = vld [vmem:[#allocation12 + $0x70] ss:$8 sps:$4 sm:$0xff]   ;;  %v4221_v14 = vld [vmem:[#allocation12 + $0x84] ss:$8 sps:$4 sm:$0xff]   ;;  %v4298_v40 = vld [vmem:[#allocation10 + $0x14] ss:$8 sps:$4 sm:$0xff]  }
 0x10c   : > { %761 = vmatprep.subr.bf16.mxu0 %v4170_v15  ;;  %v4223_v15 = vld [vmem:[#allocation12 + $0x80] ss:$8 sps:$4 sm:$0xff]   ;;  %v4244_v32 = vld [vmem:[#allocation12 + $0xf0] ss:$8 sps:$4 sm:$0xff]   ;;  %v4301_v44 = vld [vmem:[#allocation10 + $0x24] ss:$8 sps:$4 sm:$0xff]  }
 0x10d   : > { %v4296_v42 = vld [vmem:[#allocation10 + $0x10] ss:$8 sps:$4 sm:$0xff]  }
 0x10e   : > { %1173 = vmatpush1.bf16.msra.mxu1 %v4259_v46 }
 0x10f   : > { %762 = vmatpush1.bf16.msra.mxu0 %v4172_v16  ;;  %1174 = vmatprep.subr.bf16.mxu1 %v4260_v47  ;;  %v4224_v16 = vld [vmem:[#allocation12 + $0x94] ss:$8 sps:$4 sm:$0xff]  }
 0x110   : > { %763 = vmatprep.subr.bf16.mxu0 %v4173_v17  ;;  %v4226_v17 = vld [vmem:[#allocation12 + $0x90] ss:$8 sps:$4 sm:$0xff]  }
 0x112   : > { %1175 = vmatpush1.bf16.msra.mxu1 %v4262_v48 }
 0x113   : > { %764 = vmatpush1.bf16.msra.mxu0 %v4175_v18  ;;  %1176 = vmatprep.subr.bf16.mxu1 %v4263_v50  ;;  %v4227_v18 = vld [vmem:[#allocation12 + $0xa4] ss:$8 sps:$4 sm:$0xff]   ;;  %v4304_v50 = vld [vmem:[#allocation10 + $0x34] ss:$8 sps:$4 sm:$0xff]  }
 0x114   : > { %765 = vmatprep.subr.bf16.mxu0 %v4176_v19  ;;  %v4229_v19 = vld [vmem:[#allocation12 + $0xa0] ss:$8 sps:$4 sm:$0xff]  }
 0x116   : > { %1177 = vmatpush1.bf16.msra.mxu1 %v4265_v52  ;;  %v4302_v52 = vld [vmem:[#allocation10 + $0x30] ss:$8 sps:$4 sm:$0xff]  }
 0x117   : > { %766 = vmatpush1.bf16.msra.mxu0 %v4178_v20  ;;  %1178 = vmatprep.subr.bf16.mxu1 %v4266_v53  ;;  %v4230_v20 = vld [vmem:[#allocation12 + $0xb4] ss:$8 sps:$4 sm:$0xff]  }
 0x118   : > { %767 = vmatprep.subr.bf16.mxu0 %v4179_v21  ;;  %v4232_v21 = vld [vmem:[#allocation12 + $0xb0] ss:$8 sps:$4 sm:$0xff]  }
 0x11a   : > { %1179 = vmatpush1.bf16.msra.mxu1 %v4268_v54  ;;  %v4307_v54 = vld [vmem:[#allocation10 + $0x44] ss:$8 sps:$4 sm:$0xff]  }
 0x11b   : > { %768 = vmatpush1.bf16.msra.mxu0 %v4181_v22  ;;  %1180 = vmatprep.subr.bf16.mxu1 %v4269_v56  ;;  %v4290_v22 = vld [vmem:[#allocation9 + $0xf4] ss:$8 sps:$4 sm:$0xff]  }
 0x11c   : > { %769 = vmatprep.subr.bf16.mxu0 %v4182_v23  ;;  %v4233_v23 = vld [vmem:[#allocation12 + $0xc4] ss:$8 sps:$4 sm:$0xff]  }
 0x11e   : > { %1181 = vmatpush1.bf16.msra.mxu1 %v4271_v58 }
 0x11f   : > { %770 = vmatpush1.bf16.msra.mxu0 %v4184_v24  ;;  %1182 = vmatprep.subr.bf16.mxu1 %v4272_v59  ;;  %v4292_v24 = vld [vmem:[#allocation9 + $0xf0] ss:$8 sps:$4 sm:$0xff]   ;;  %v4305_v59 = vld [vmem:[#allocation10 + $0x40] ss:$8 sps:$4 sm:$0xff]  }
 0x120   : > { %771 = vmatprep.subr.bf16.mxu0 %v4185_v25  ;;  %v4295_v25 = vld [vmem:[#allocation10 + $0x4] ss:$8 sps:$4 sm:$0xff]  }
 0x122   : > { %1183 = vmatpush1.bf16.msra.mxu1 %v4274_v60  ;;  %v4310_v60 = vld [vmem:[#allocation10 + $0x54] ss:$8 sps:$4 sm:$0xff]  }
 0x123   : > { %772 = vmatpush1.bf16.msra.mxu0 %v4187_v26  ;;  %1184 = vmatprep.subr.bf16.mxu1 %v4275_v62  ;;  %v4235_v26 = vld [vmem:[#allocation12 + $0xc0] ss:$8 sps:$4 sm:$0xff]   ;;  %v4308_v62 = vld [vmem:[#allocation10 + $0x50] ss:$8 sps:$4 sm:$0xff]  }
 0x124   : > { %773 = vmatprep.subr.bf16.mxu0 %v4188_v27  ;;  %v4236_v27 = vld [vmem:[#allocation12 + $0xd4] ss:$8 sps:$4 sm:$0xff]  }
 0x126   : > { %1185 = vmatpush1.bf16.msra.mxu1 %v4277_v0  ;;  %v4313_v0 = vld [vmem:[#allocation10 + $0x64] ss:$8 sps:$4 sm:$0xff]  }
 0x127   : > { %774 = vmatpush1.bf16.msra.mxu0 %v4190_v28  ;;  %1186 = vmatprep.subr.bf16.mxu1 %v4278_v1  ;;  %v4238_v28 = vld [vmem:[#allocation12 + $0xd0] ss:$8 sps:$4 sm:$0xff]  }
 0x128   : > { %775 = vmatprep.subr.bf16.mxu0 %v4191_v29  ;;  %v4239_v29 = vld [vmem:[#allocation12 + $0xe4] ss:$8 sps:$4 sm:$0xff]  }
 0x12a   : > { %1187 = vmatpush1.bf16.msra.mxu1 %v4280_v2 }
 0x12b   : > { %776 = vmatpush1.bf16.msra.mxu0 %v4193_v30  ;;  %1188 = vmatprep.subr.bf16.mxu1 %v4281_v4  ;;  %v4241_v30 = vld [vmem:[#allocation12 + $0xe0] ss:$8 sps:$4 sm:$0xff]  }
 0x12c   : > { %777 = vmatprep.subr.bf16.mxu0 %v4194_v31  ;;  %v4242_v31 = vld [vmem:[#allocation12 + $0xf4] ss:$8 sps:$4 sm:$0xff]  }
 0x12e   : > { %1189 = vmatpush1.bf16.msra.mxu1 %v4283_v6  ;;  %v4316_v6 = vld [vmem:[#allocation10 + $0x74] ss:$8 sps:$4 sm:$0xff]  }
 0x12f   : > { %778 = vmatpush1.bf16.msra.mxu0 %v4196_v35  ;;  %1190 = vmatprep.subr.bf16.mxu1 %v4284_v7 }
 0x132   : > { %780 = vmatmul.mubr.bf16.vlgmr.msra.gmra.mrb[0].mxu0 %v4197_v37  ;;  %1191 = vmatpush1.bf16.msra.mxu1 %v4286_v8  ;;  %v4314_v8 = vld [vmem:[#allocation10 + $0x70] ss:$8 sps:$4 sm:$0xff]  }
 0x133   : > { %789 = vmatprep.mubr.bf16.mxu0 %v4200_v39  ;;  %1192 = vmatprep.subr.bf16.mxu1 %v4287_v10  ;;  %v4293_v39 = vld [vmem:[#allocation10] ss:$8 sps:$4 sm:$0xff]   ;;  %v4319_v10 = vld [vmem:[#allocation10 + $0x84] ss:$8 sps:$4 sm:$0xff]  }
 0x136   : > { %1193 = vmatpush1.bf16.msra.mxu1 %v4289_v12 }
 0x137   : > { %1194 = vmatprep.subr.bf16.mxu1 %v4290_v22 }
 0x13a   : > { %790 = vmatmul.mubr.bf16.gmra.mrb[4].mxu0 %v4202_v43  ;;  %1195 = vmatpush1.bf16.msra.mxu1 %v4292_v24 }
 0x13b   : > { %799 = vmatprep.mubr.bf16.mxu0 %v4203_v45  ;;  %1501 = vmatprep.subr.bf16.mxu1 %v4295_v25  ;;  %v4323_v25 = vld [vmem:[#allocation10 + $0xa0] ss:$8 sps:$4 sm:$0xff]  }
 0x142   : > { %800 = vmatmul.mubr.bf16.gmra.mrb[8].mxu0 %v4205_v49  ;;  %v4299_v49 = vld [vmem:[#allocation10 + $0x20] ss:$8 sps:$4 sm:$0xff]  }
 0x143   : > { %809 = vmatprep.mubr.bf16.mxu0 %v4206_v51 }
 0x14a   : > { %810 = vmatmul.mubr.bf16.gmra.mrb[12].mxu0 %v4208_v55 }
 0x14b   : > { %819 = vmatprep.mubr.bf16.mxu0 %v4209_v57 }
 0x152   : > { %820 = vmatmul.mubr.bf16.gmra.mrb[16].mxu0 %v4211_v61 }
 0x153   : > { %829 = vmatprep.mubr.bf16.mxu0 %v4212_v63 }
 0x15a   : > { %830 = vmatmul.mubr.bf16.gmra.mrb[20].mxu0 %v4214_v3 }
 0x15b   : > { %839 = vmatprep.mubr.bf16.mxu0 %v4215_v5  ;;  %v4311_v5 = vld [vmem:[#allocation10 + $0x60] ss:$8 sps:$4 sm:$0xff]  }
 0x162   : > { %840 = vmatmul.mubr.bf16.gmra.mrb[24].mxu0 %v4217_v9 }
 0x163   : > { %849 = vmatprep.mubr.bf16.mxu0 %v4218_v11 }
 0x16a   : > { %850 = vmatmul.mubr.bf16.gmra.mrb[28].mxu0 %v4220_v13 }
 0x16b   : > { %859 = vmatprep.mubr.bf16.mxu0 %v4221_v14 }
 0x172   : > { %860 = vmatmul.mubr.bf16.gmra.mrb[32].mxu0 %v4223_v15  ;;  %v4317_v15 = vld [vmem:[#allocation10 + $0x80] ss:$8 sps:$4 sm:$0xff]  }
 0x173   : > { %869 = vmatprep.mubr.bf16.mxu0 %v4224_v16  ;;  %v4322_v16 = vld [vmem:[#allocation10 + $0x94] ss:$8 sps:$4 sm:$0xff]  }
 0x17a   : > { %870 = vmatmul.mubr.bf16.gmra.mrb[36].mxu0 %v4226_v17 }
 0x17b   : > { %879 = vmatprep.mubr.bf16.mxu0 %v4227_v18  ;;  %v4320_v18 = vld [vmem:[#allocation10 + $0x90] ss:$8 sps:$4 sm:$0xff]  }
 0x182   : > { %880 = vmatmul.mubr.bf16.gmra.mrb[40].mxu0 %v4229_v19 }
 0x183   : > { %889 = vmatprep.mubr.bf16.mxu0 %v4230_v20  ;;  %v4325_v20 = vld [vmem:[#allocation10 + $0xa4] ss:$8 sps:$4 sm:$0xff]  }
 0x18a   : > { %890 = vmatmul.mubr.bf16.gmra.mrb[44].mxu0 %v4232_v21 }
 0x18b   : > { %899 = vmatprep.mubr.bf16.mxu0 %v4233_v23 }
 0x192   : > { %900 = vmatmul.mubr.bf16.gmra.mrb[48].mxu0 %v4235_v26  ;;  %v4328_v26 = vld [vmem:[#allocation10 + $0xb4] ss:$8 sps:$4 sm:$0xff]  }
 0x193   : > { %909 = vmatprep.mubr.bf16.mxu0 %v4236_v27 }
 0x19a   : > { %910 = vmatmul.mubr.bf16.gmra.mrb[52].mxu0 %v4238_v28  ;;  %v4326_v28 = vld [vmem:[#allocation10 + $0xb0] ss:$8 sps:$4 sm:$0xff]  }
 0x19b   : > { %919 = vmatprep.mubr.bf16.mxu0 %v4239_v29 }
 0x1a2   : > { %920 = vmatmul.mubr.bf16.gmra.mrb[56].mxu0 %v4241_v30  ;;  %v4331_v30 = vld [vmem:[#allocation10 + $0xc4] ss:$8 sps:$4 sm:$0xff]  }
 0x1a3   : > { %929 = vmatprep.mubr.bf16.mxu0 %v4242_v31 }
 0x1aa   : > { %930 = vmatmul.mubr.bf16.gmra.mrb[60].mxu0 %v4244_v32 }
 0x205   : > { %v781_v33 = vpop.f32.mrb[0].mxu0 }
 0x206   : > { %v783_v34 = vpop.f32.mrb[1].mxu0 }
 0x207   : > { %v785_v35 = vpop.f32.mrb[2].mxu0 }
 0x208   : > { %v940_v36 = vpack.c.bf16 %v785_v35, %v781_v33  ;;  %v787_v37 = vpop.f32.mrb[3].mxu0  ;;  %v4329_v35 = vld [vmem:[#allocation10 + $0xc0] ss:$8 sps:$4 sm:$0xff]  }
 0x209   : > { %v941_v38 = vpack.c.bf16 %v787_v37, %v783_v34 }
 0x20b   : > { %1196 = vmatprep.mubr.bf16.mxu1 %v941_v38  ;;  %v4332_v38 = vld [vmem:[#allocation10 + $0xd0] ss:$8 sps:$4 sm:$0xff]  }
 0x20c   : > { %1197 = vmatmul.mubr.bf16.vlgmr.msra.gmra.mrb[0].mxu1 %v940_v36  ;;  %v4334_v36 = vld [vmem:[#allocation10 + $0xd4] ss:$8 sps:$4 sm:$0xff]  }
 0x20d   : > { %1502 = vmatpush1.bf16.msra.mxu1 %v4293_v39  ;;  %v791_v41 = vpop.f32.mrb[4].mxu0 }
 0x20e   : > { %v793_v43 = vpop.f32.mrb[5].mxu0  ;;  %1503 = vmatprep.subr.bf16.mxu1 %v4298_v40  ;;  %v4337_v40 = vld [vmem:[#allocation10 + $0xe4] ss:$8 sps:$4 sm:$0xff]  }
 0x20f   : > { %v795_v45 = vpop.f32.mrb[6].mxu0 }
 0x210   : > { %v942_v46 = vpack.c.bf16 %v795_v45, %v791_v41  ;;  %v797_v47 = vpop.f32.mrb[7].mxu0  ;;  %v4335_v45 = vld [vmem:[#allocation10 + $0xe0] ss:$8 sps:$4 sm:$0xff]  }
 0x211   : > { %v943_v48 = vpack.c.bf16 %v797_v47, %v793_v43  ;;  %1504 = vmatpush1.bf16.msra.mxu1 %v4296_v42 }
 0x212   : > { %1505 = vmatprep.subr.bf16.mxu1 %v4301_v44 }
 0x213   : > { %1206 = vmatprep.mubr.bf16.mxu1 %v943_v48  ;;  %v4338_v48 = vld [vmem:[#allocation10 + $0xf0] ss:$8 sps:$4 sm:$0xff]  }
 0x214   : > { %1207 = vmatmul.mubr.bf16.gmra.mrb[4].mxu1 %v942_v46  ;;  %v4340_v46 = vld [vmem:[#allocation10 + $0xf4] ss:$8 sps:$4 sm:$0xff]  }
 0x215   : > { %1506 = vmatpush1.bf16.msra.mxu1 %v4299_v49  ;;  %v801_v51 = vpop.f32.mrb[8].mxu0 }
 0x216   : > { %v803_v53 = vpop.f32.mrb[9].mxu0  ;;  %1507 = vmatprep.subr.bf16.mxu1 %v4304_v50 }
 0x217   : > { %v805_v55 = vpop.f32.mrb[10].mxu0 }
 0x218   : > { %v944_v56 = vpack.c.bf16 %v805_v55, %v801_v51  ;;  %v807_v57 = vpop.f32.mrb[11].mxu0 }
 0x219   : > { %v945_v58 = vpack.c.bf16 %v807_v57, %v803_v53  ;;  %1508 = vmatpush1.bf16.msra.mxu1 %v4302_v52 }
 0x21a   : > { %1509 = vmatprep.subr.bf16.mxu1 %v4307_v54 }
 0x21b   : > { %1216 = vmatprep.mubr.bf16.mxu1 %v945_v58 }
 0x21c   : > { %1217 = vmatmul.mubr.bf16.gmra.mrb[8].mxu1 %v944_v56 }
 0x21d   : > { %1510 = vmatpush1.bf16.msra.mxu1 %v4305_v59  ;;  %v811_v61 = vpop.f32.mrb[12].mxu0 }
 0x21e   : > { %v813_v63 = vpop.f32.mrb[13].mxu0  ;;  %1511 = vmatprep.subr.bf16.mxu1 %v4310_v60 }
 0x21f   : > { %v815_v1 = vpop.f32.mrb[14].mxu0 }
 0x220   : > { %v946_v2 = vpack.c.bf16 %v815_v1, %v811_v61  ;;  %v817_v3 = vpop.f32.mrb[15].mxu0 }
 0x221   : > { %v947_v4 = vpack.c.bf16 %v817_v3, %v813_v63  ;;  %1512 = vmatpush1.bf16.msra.mxu1 %v4308_v62 }
 0x222   : > { %1513 = vmatprep.subr.bf16.mxu1 %v4313_v0 }
 0x223   : > { %1226 = vmatprep.mubr.bf16.mxu1 %v947_v4 }
 0x224   : > { %1227 = vmatmul.mubr.bf16.gmra.mrb[12].mxu1 %v946_v2 }
 0x225   : > { %1514 = vmatpush1.bf16.msra.mxu1 %v4311_v5  ;;  %v821_v7 = vpop.f32.mrb[16].mxu0 }
 0x226   : > { %v823_v9 = vpop.f32.mrb[17].mxu0  ;;  %1515 = vmatprep.subr.bf16.mxu1 %v4316_v6 }
 0x227   : > { %v825_v11 = vpop.f32.mrb[18].mxu0 }
 0x228   : > { %v948_v12 = vpack.c.bf16 %v825_v11, %v821_v7  ;;  %v827_v13 = vpop.f32.mrb[19].mxu0 }
 0x229   : > { %v949_v14 = vpack.c.bf16 %v827_v13, %v823_v9  ;;  %1516 = vmatpush1.bf16.msra.mxu1 %v4314_v8 }
 0x22a   : > { %1517 = vmatprep.subr.bf16.mxu1 %v4319_v10 }
 0x22b   : > { %1236 = vmatprep.mubr.bf16.mxu1 %v949_v14 }
 0x22c   : > { %1237 = vmatmul.mubr.bf16.gmra.mrb[16].mxu1 %v948_v12 }
 0x22d   : > { %1518 = vmatpush1.bf16.msra.mxu1 %v4317_v15  ;;  %v831_v17 = vpop.f32.mrb[20].mxu0 }
 0x22e   : > { %v833_v19 = vpop.f32.mrb[21].mxu0  ;;  %1519 = vmatprep.subr.bf16.mxu1 %v4322_v16 }
 0x22f   : > { %v835_v21 = vpop.f32.mrb[22].mxu0 }
 0x230   : > { %v950_v22 = vpack.c.bf16 %v835_v21, %v831_v17  ;;  %v837_v23 = vpop.f32.mrb[23].mxu0 }
 0x231   : > { %v951_v24 = vpack.c.bf16 %v837_v23, %v833_v19  ;;  %1520 = vmatpush1.bf16.msra.mxu1 %v4320_v18 }
 0x232   : > { %1521 = vmatprep.subr.bf16.mxu1 %v4325_v20 }
 0x233   : > { %1246 = vmatprep.mubr.bf16.mxu1 %v951_v24 }
 0x234   : > { %1247 = vmatmul.mubr.bf16.gmra.mrb[20].mxu1 %v950_v22 }
 0x235   : > { %1522 = vmatpush1.bf16.msra.mxu1 %v4323_v25  ;;  %v841_v27 = vpop.f32.mrb[24].mxu0 }
 0x236   : > { %v843_v29 = vpop.f32.mrb[25].mxu0  ;;  %1523 = vmatprep.subr.bf16.mxu1 %v4328_v26 }
 0x237   : > { %v845_v31 = vpop.f32.mrb[26].mxu0 }
 0x238   : > { %v952_v32 = vpack.c.bf16 %v845_v31, %v841_v27  ;;  %v847_v33 = vpop.f32.mrb[27].mxu0 }
 0x239   : > { %v953_v34 = vpack.c.bf16 %v847_v33, %v843_v29  ;;  %1524 = vmatpush1.bf16.msra.mxu1 %v4326_v28 }
 0x23a   : > { %1525 = vmatprep.subr.bf16.mxu1 %v4331_v30 }
 0x23b   : > { %1256 = vmatprep.mubr.bf16.mxu1 %v953_v34 }
 0x23c   : > { %1257 = vmatmul.mubr.bf16.gmra.mrb[24].mxu1 %v952_v32 }
 0x23d   : > { %1526 = vmatpush1.bf16.msra.mxu1 %v4329_v35  ;;  %v851_v37 = vpop.f32.mrb[28].mxu0 }
 0x23e   : > { %v853_v39 = vpop.f32.mrb[29].mxu0  ;;  %1527 = vmatprep.subr.bf16.mxu1 %v4334_v36 }
 0x23f   : > { %v855_v41 = vpop.f32.mrb[30].mxu0 }
 0x240   : > { %v954_v42 = vpack.c.bf16 %v855_v41, %v851_v37  ;;  %v857_v43 = vpop.f32.mrb[31].mxu0 }
 0x241   : > { %v955_v44 = vpack.c.bf16 %v857_v43, %v853_v39  ;;  %1528 = vmatpush1.bf16.msra.mxu1 %v4332_v38 }
 0x242   : > { %1529 = vmatprep.subr.bf16.mxu1 %v4337_v40 }
 0x243   : > { %1266 = vmatprep.mubr.bf16.mxu1 %v955_v44 }
 0x244   : > { %1267 = vmatmul.mubr.bf16.gmra.mrb[28].mxu1 %v954_v42 }
 0x245   : > { %1530 = vmatpush1.bf16.msra.mxu1 %v4335_v45  ;;  %v861_v47 = vpop.f32.mrb[32].mxu0 }
 0x246   : > { %v863_v49 = vpop.f32.mrb[33].mxu0  ;;  %1531 = vmatprep.subr.bf16.mxu1 %v4340_v46 }
 0x247   : > { %v865_v50 = vpop.f32.mrb[34].mxu0 }
 0x248   : > { %v956_v51 = vpack.c.bf16 %v865_v50, %v861_v47  ;;  %v867_v52 = vpop.f32.mrb[35].mxu0 }
 0x249   : > { %v957_v53 = vpack.c.bf16 %v867_v52, %v863_v49  ;;  %1532 = vmatpush1.bf16.msra.mxu1 %v4338_v48 }
 0x24b   : > { %1533 = vmatprep.mubr.bf16.mxu1 %v957_v53 }
 0x24c   : > { %1534 = vmatmul.mubr.bf16.vlgmr.msra.gmra.mrb[32].mxu1 %v956_v51 }
 0x24d   : > { %v871_v54 = vpop.f32.mrb[36].mxu0 }
 0x24e   : > { %v873_v55 = vpop.f32.mrb[37].mxu0 }
 0x24f   : > { %v875_v56 = vpop.f32.mrb[38].mxu0 }
 0x250   : > { %v958_v57 = vpack.c.bf16 %v875_v56, %v871_v54  ;;  %v877_v58 = vpop.f32.mrb[39].mxu0 }
 0x251   : > { %v959_v59 = vpack.c.bf16 %v877_v58, %v873_v55 }
 0x253   : > { %1543 = vmatprep.mubr.bf16.mxu1 %v959_v59 }
 0x254   : > { %1544 = vmatmul.mubr.bf16.gmra.mrb[36].mxu1 %v958_v57 }
 0x255   : > { %v881_v60 = vpop.f32.mrb[40].mxu0 }
 0x256   : > { %v883_v61 = vpop.f32.mrb[41].mxu0 }
 0x257   : > { %v885_v62 = vpop.f32.mrb[42].mxu0 }
 0x258   : > { %v960_v63 = vpack.c.bf16 %v885_v62, %v881_v60  ;;  %v887_v0 = vpop.f32.mrb[43].mxu0 }
 0x259   : > { %v961_v1 = vpack.c.bf16 %v887_v0, %v883_v61 }
 0x25b   : > { %1553 = vmatprep.mubr.bf16.mxu1 %v961_v1 }
 0x25c   : > { %1554 = vmatmul.mubr.bf16.gmra.mrb[40].mxu1 %v960_v63 }
 0x25d   : > { %v891_v2 = vpop.f32.mrb[44].mxu0 }
 0x25e   : > { %v893_v3 = vpop.f32.mrb[45].mxu0 }
 0x25f   : > { %v895_v4 = vpop.f32.mrb[46].mxu0 }
 0x260   : > { %v962_v5 = vpack.c.bf16 %v895_v4, %v891_v2  ;;  %v897_v6 = vpop.f32.mrb[47].mxu0 }
 0x261   : > { %v963_v7 = vpack.c.bf16 %v897_v6, %v893_v3 }
 0x263   : > { %1563 = vmatprep.mubr.bf16.mxu1 %v963_v7 }
 0x264   : > { %1564 = vmatmul.mubr.bf16.gmra.mrb[44].mxu1 %v962_v5 }
 0x265   : > { %v901_v8 = vpop.f32.mrb[48].mxu0 }
 0x266   : > { %v903_v9 = vpop.f32.mrb[49].mxu0 }
 0x267   : > { %v905_v10 = vpop.f32.mrb[50].mxu0 }
 0x268   : > { %v964_v11 = vpack.c.bf16 %v905_v10, %v901_v8  ;;  %v907_v12 = vpop.f32.mrb[51].mxu0 }
 0x269   : > { %v965_v13 = vpack.c.bf16 %v907_v12, %v903_v9 }
 0x26b   : > { %1573 = vmatprep.mubr.bf16.mxu1 %v965_v13 }
 0x26c   : > { %1574 = vmatmul.mubr.bf16.gmra.mrb[48].mxu1 %v964_v11 }
 0x26d   : > { %v911_v14 = vpop.f32.mrb[52].mxu0 }
 0x26e   : > { %v913_v15 = vpop.f32.mrb[53].mxu0 }
 0x26f   : > { %v915_v16 = vpop.f32.mrb[54].mxu0 }
 0x270   : > { %v966_v17 = vpack.c.bf16 %v915_v16, %v911_v14  ;;  %v917_v18 = vpop.f32.mrb[55].mxu0 }
 0x271   : > { %v967_v19 = vpack.c.bf16 %v917_v18, %v913_v15 }
 0x273   : > { %1583 = vmatprep.mubr.bf16.mxu1 %v967_v19 }
 0x274   : > { %1584 = vmatmul.mubr.bf16.gmra.mrb[52].mxu1 %v966_v17 }
 0x275   : > { %v921_v20 = vpop.f32.mrb[56].mxu0 }
 0x276   : > { %v923_v21 = vpop.f32.mrb[57].mxu0 }
 0x277   : > { %v925_v22 = vpop.f32.mrb[58].mxu0 }
 0x278   : > { %v968_v23 = vpack.c.bf16 %v925_v22, %v921_v20  ;;  %v927_v24 = vpop.f32.mrb[59].mxu0 }
 0x279   : > { %v969_v25 = vpack.c.bf16 %v927_v24, %v923_v21 }
 0x27b   : > { %1593 = vmatprep.mubr.bf16.mxu1 %v969_v25 }
 0x27c   : > { %1594 = vmatmul.mubr.bf16.gmra.mrb[56].mxu1 %v968_v23 }
 0x27d   : > { %v931_v26 = vpop.f32.mrb[60].mxu0 }
 0x27e   : > { %v933_v27 = vpop.f32.mrb[61].mxu0 }
 0x27f   : > { %v935_v28 = vpop.f32.mrb[62].mxu0 }
 0x280   : > { %v970_v29 = vpack.c.bf16 %v935_v28, %v931_v26  ;;  %v937_v30 = vpop.f32.mrb[63].mxu0 }
 0x281   : > { %v971_v31 = vpack.c.bf16 %v937_v30, %v933_v27 }
 0x283   : > { %1603 = vmatprep.mubr.bf16.mxu1 %v971_v31 }
 0x284   : > { %1604 = vmatmul.mubr.bf16.gmra.mrb[60].mxu1 %v970_v29 }
 0x2df   : > { %v1198_v32 = vpop.f32.mrb[0].mxu1 }
 0x2e0   : > { %v1200_v33 = vpop.f32.mrb[1].mxu1 }
 0x2e1   : > { %v1202_v34 = vpop.f32.mrb[2].mxu1 }
 0x2e2   : > { %v1277_v35 = vpack.c.bf16 %v1202_v34, %v1198_v32  ;;  %v1204_v36 = vpop.f32.mrb[3].mxu1 }
 0x2e3   : > { %v1278_v37 = vpack.c.bf16 %v1204_v36, %v1200_v33 }
 0x2e4   : > { %1293 = vst [vmem:[#allocation2] sm:$0xff] %v1277_v35 }
 0x2e5   : > { %1294 = vst [vmem:[#allocation2 + $0x8] sm:$0xff] %v1278_v37 }
 0x2e7   : > { %v1208_v38 = vpop.f32.mrb[4].mxu1 }
 0x2e8   : > { %v1210_v39 = vpop.f32.mrb[5].mxu1 }
 0x2e9   : > { %v1212_v40 = vpop.f32.mrb[6].mxu1 }
 0x2ea   : > { %v1279_v41 = vpack.c.bf16 %v1212_v40, %v1208_v38  ;;  %v1214_v42 = vpop.f32.mrb[7].mxu1 }
 0x2eb   : > { %v1280_v43 = vpack.c.bf16 %v1214_v42, %v1210_v39 }
 0x2ec   : > { %1295 = vst [vmem:[#allocation2 + $0x10] sm:$0xff] %v1279_v41 }
 0x2ed   : > { %1296 = vst [vmem:[#allocation2 + $0x18] sm:$0xff] %v1280_v43 }
 0x2ef   : > { %v1218_v44 = vpop.f32.mrb[8].mxu1 }
 0x2f0   : > { %v1220_v45 = vpop.f32.mrb[9].mxu1 }
 0x2f1   : > { %v1222_v46 = vpop.f32.mrb[10].mxu1 }
 0x2f2   : > { %v1281_v47 = vpack.c.bf16 %v1222_v46, %v1218_v44  ;;  %v1224_v48 = vpop.f32.mrb[11].mxu1 }
 0x2f3   : > { %v1282_v49 = vpack.c.bf16 %v1224_v48, %v1220_v45 }
 0x2f4   : > { %1297 = vst [vmem:[#allocation2 + $0x20] sm:$0xff] %v1281_v47 }
 0x2f5   : > { %1298 = vst [vmem:[#allocation2 + $0x28] sm:$0xff] %v1282_v49 }
 0x2f7   : > { %v1228_v50 = vpop.f32.mrb[12].mxu1 }
 0x2f8   : > { %v1230_v51 = vpop.f32.mrb[13].mxu1 }
 0x2f9   : > { %v1232_v52 = vpop.f32.mrb[14].mxu1 }
 0x2fa   : > { %v1283_v53 = vpack.c.bf16 %v1232_v52, %v1228_v50  ;;  %v1234_v54 = vpop.f32.mrb[15].mxu1 }
 0x2fb   : > { %v1284_v55 = vpack.c.bf16 %v1234_v54, %v1230_v51 }
 0x2fc   : > { %1299 = vst [vmem:[#allocation2 + $0x30] sm:$0xff] %v1283_v53 }
 0x2fd   : > { %1300 = vst [vmem:[#allocation2 + $0x38] sm:$0xff] %v1284_v55 }
 0x2ff   : > { %v1238_v56 = vpop.f32.mrb[16].mxu1 }
 0x300   : > { %v1240_v57 = vpop.f32.mrb[17].mxu1 }
 0x301   : > { %v1242_v58 = vpop.f32.mrb[18].mxu1 }
 0x302   : > { %v1285_v59 = vpack.c.bf16 %v1242_v58, %v1238_v56  ;;  %v1244_v60 = vpop.f32.mrb[19].mxu1 }
 0x303   : > { %v1286_v61 = vpack.c.bf16 %v1244_v60, %v1240_v57 }
 0x304   : > { %1301 = vst [vmem:[#allocation2 + $0x40] sm:$0xff] %v1285_v59 }
 0x305   : > { %1302 = vst [vmem:[#allocation2 + $0x48] sm:$0xff] %v1286_v61 }
 0x307   : > { %v1248_v62 = vpop.f32.mrb[20].mxu1 }
 0x308   : > { %v1250_v63 = vpop.f32.mrb[21].mxu1 }
 0x309   : > { %v1252_v0 = vpop.f32.mrb[22].mxu1 }
 0x30a   : > { %v1287_v1 = vpack.c.bf16 %v1252_v0, %v1248_v62  ;;  %v1254_v2 = vpop.f32.mrb[23].mxu1 }
 0x30b   : > { %v1288_v3 = vpack.c.bf16 %v1254_v2, %v1250_v63 }
 0x30c   : > { %1303 = vst [vmem:[#allocation2 + $0x50] sm:$0xff] %v1287_v1 }
 0x30d   : > { %1304 = vst [vmem:[#allocation2 + $0x58] sm:$0xff] %v1288_v3 }
 0x30f   : > { %v1258_v4 = vpop.f32.mrb[24].mxu1 }
 0x310   : > { %v1260_v5 = vpop.f32.mrb[25].mxu1 }
 0x311   : > { %v1262_v6 = vpop.f32.mrb[26].mxu1 }
 0x312   : > { %v1289_v7 = vpack.c.bf16 %v1262_v6, %v1258_v4  ;;  %v1264_v8 = vpop.f32.mrb[27].mxu1 }
 0x313   : > { %v1290_v9 = vpack.c.bf16 %v1264_v8, %v1260_v5 }
 0x314   : > { %1305 = vst [vmem:[#allocation2 + $0x60] sm:$0xff] %v1289_v7 }
 0x315   : > { %1306 = vst [vmem:[#allocation2 + $0x68] sm:$0xff] %v1290_v9 }
 0x317   : > { %v1268_v10 = vpop.f32.mrb[28].mxu1 }
 0x318   : > { %v1270_v11 = vpop.f32.mrb[29].mxu1 }
 0x319   : > { %v1272_v12 = vpop.f32.mrb[30].mxu1 }
 0x31a   : > { %v1291_v13 = vpack.c.bf16 %v1272_v12, %v1268_v10  ;;  %v1274_v14 = vpop.f32.mrb[31].mxu1 }
 0x31b   : > { %v1292_v15 = vpack.c.bf16 %v1274_v14, %v1270_v11 }
 0x31c   : > { %1307 = vst [vmem:[#allocation2 + $0x70] sm:$0xff] %v1291_v13 }
 0x31d   : > { %1308 = vst [vmem:[#allocation2 + $0x78] sm:$0xff] %v1292_v15 }
 0x31f   : > { %v1535_v16 = vpop.f32.mrb[32].mxu1 }
 0x320   : > { %v1537_v17 = vpop.f32.mrb[33].mxu1 }
 0x321   : > { %v1539_v18 = vpop.f32.mrb[34].mxu1 }
 0x322   : > { %v1614_v19 = vpack.c.bf16 %v1539_v18, %v1535_v16  ;;  %v1541_v20 = vpop.f32.mrb[35].mxu1 }
 0x323   : > { %v1615_v21 = vpack.c.bf16 %v1541_v20, %v1537_v17 }
 0x324   : > { %1630 = vst [vmem:[#allocation3] sm:$0xff] %v1614_v19 }
 0x325   : > { %1631 = vst [vmem:[#allocation3 + $0x8] sm:$0xff] %v1615_v21 }
 0x327   : > { %v1545_v22 = vpop.f32.mrb[36].mxu1 }
 0x328   : > { %v1547_v23 = vpop.f32.mrb[37].mxu1 }
 0x329   : > { %v1549_v24 = vpop.f32.mrb[38].mxu1 }
 0x32a   : > { %v1616_v25 = vpack.c.bf16 %v1549_v24, %v1545_v22  ;;  %v1551_v26 = vpop.f32.mrb[39].mxu1 }
 0x32b   : > { %v1617_v27 = vpack.c.bf16 %v1551_v26, %v1547_v23 }
 0x32c   : > { %1632 = vst [vmem:[#allocation3 + $0x10] sm:$0xff] %v1616_v25 }
 0x32d   : > { %1633 = vst [vmem:[#allocation3 + $0x18] sm:$0xff] %v1617_v27 }
 0x32f   : > { %v1555_v28 = vpop.f32.mrb[40].mxu1 }
 0x330   : > { %v1557_v29 = vpop.f32.mrb[41].mxu1 }
 0x331   : > { %v1559_v30 = vpop.f32.mrb[42].mxu1 }
 0x332   : > { %v1618_v31 = vpack.c.bf16 %v1559_v30, %v1555_v28  ;;  %v1561_v32 = vpop.f32.mrb[43].mxu1 }
 0x333   : > { %v1619_v33 = vpack.c.bf16 %v1561_v32, %v1557_v29 }
 0x334   : > { %1634 = vst [vmem:[#allocation3 + $0x20] sm:$0xff] %v1618_v31 }
 0x335   : > { %1635 = vst [vmem:[#allocation3 + $0x28] sm:$0xff] %v1619_v33 }
 0x337   : > { %v1565_v34 = vpop.f32.mrb[44].mxu1 }
 0x338   : > { %v1567_v35 = vpop.f32.mrb[45].mxu1 }
 0x339   : > { %v1569_v36 = vpop.f32.mrb[46].mxu1 }
 0x33a   : > { %v1620_v37 = vpack.c.bf16 %v1569_v36, %v1565_v34  ;;  %v1571_v38 = vpop.f32.mrb[47].mxu1 }
 0x33b   : > { %v1621_v39 = vpack.c.bf16 %v1571_v38, %v1567_v35 }
 0x33c   : > { %1636 = vst [vmem:[#allocation3 + $0x30] sm:$0xff] %v1620_v37 }
 0x33d   : > { %1637 = vst [vmem:[#allocation3 + $0x38] sm:$0xff] %v1621_v39 }
 0x33f   : > { %v1575_v40 = vpop.f32.mrb[48].mxu1 }
 0x340   : > { %v1577_v41 = vpop.f32.mrb[49].mxu1 }
 0x341   : > { %v1579_v42 = vpop.f32.mrb[50].mxu1 }
 0x342   : > { %v1622_v43 = vpack.c.bf16 %v1579_v42, %v1575_v40  ;;  %v1581_v44 = vpop.f32.mrb[51].mxu1 }
 0x343   : > { %v1623_v45 = vpack.c.bf16 %v1581_v44, %v1577_v41 }
 0x344   : > { %1638 = vst [vmem:[#allocation3 + $0x40] sm:$0xff] %v1622_v43 }
 0x345   : > { %1639 = vst [vmem:[#allocation3 + $0x48] sm:$0xff] %v1623_v45 }
 0x347   : > { %v1585_v46 = vpop.f32.mrb[52].mxu1 }
 0x348   : > { %v1587_v47 = vpop.f32.mrb[53].mxu1 }
 0x349   : > { %v1589_v48 = vpop.f32.mrb[54].mxu1 }
 0x34a   : > { %v1624_v49 = vpack.c.bf16 %v1589_v48, %v1585_v46  ;;  %v1591_v50 = vpop.f32.mrb[55].mxu1 }
 0x34b   : > { %v1625_v51 = vpack.c.bf16 %v1591_v50, %v1587_v47 }
 0x34c   : > { %1640 = vst [vmem:[#allocation3 + $0x50] sm:$0xff] %v1624_v49 }
 0x34d   : > { %1641 = vst [vmem:[#allocation3 + $0x58] sm:$0xff] %v1625_v51 }
 0x34f   : > { %v1595_v52 = vpop.f32.mrb[56].mxu1 }
 0x350   : > { %v1597_v53 = vpop.f32.mrb[57].mxu1 }
 0x351   : > { %v1599_v54 = vpop.f32.mrb[58].mxu1 }
 0x352   : > { %v1626_v55 = vpack.c.bf16 %v1599_v54, %v1595_v52  ;;  %v1601_v56 = vpop.f32.mrb[59].mxu1 }
 0x353   : > { %v1627_v57 = vpack.c.bf16 %v1601_v56, %v1597_v53 }
 0x354   : > { %1642 = vst [vmem:[#allocation3 + $0x60] sm:$0xff] %v1626_v55 }
 0x355   : > { %1643 = vst [vmem:[#allocation3 + $0x68] sm:$0xff] %v1627_v57 }
 0x357   : > { %v1605_v58 = vpop.f32.mrb[60].mxu1 }
 0x358   : > { %v1607_v59 = vpop.f32.mrb[61].mxu1 }
 0x359   : > { %v1609_v60 = vpop.f32.mrb[62].mxu1 }
 0x35a   : > { %v1628_v61 = vpack.c.bf16 %v1609_v60, %v1605_v58  ;;  %v1611_v62 = vpop.f32.mrb[63].mxu1 }
 0x35b   : > { %v1629_v63 = vpack.c.bf16 %v1611_v62, %v1607_v59 }
 0x35c   : > { %1644 = vst [vmem:[#allocation3 + $0x70] sm:$0xff] %v1628_v61 }
 0x35d   : > { %1645 = vst [vmem:[#allocation3 + $0x78] sm:$0xff] %v1629_v63 }
 0x35e PF: > { %v4341_v0 = vld [vmem:[#allocation7 + $0x4] ss:$8 sps:$4 sm:$0xff]   ;;  %v4343_v1 = vld [vmem:[#allocation7] ss:$8 sps:$4 sm:$0xff]   ;;  %v4344_v2 = vld [vmem:[#allocation7 + $0x14] ss:$8 sps:$4 sm:$0xff]  }
 0x35f   : > { %1940 = vmatprep.subr.bf16.mxu1 %v4341_v0  ;;  %s5823_s9 = sld [smem:[#allocation21_spill]]  ;;  %v4346_v3 = vld [vmem:[#allocation7 + $0x10] ss:$8 sps:$4 sm:$0xff]   ;;  %v4347_v4 = vld [vmem:[#allocation7 + $0x24] ss:$8 sps:$4 sm:$0xff]   ;;  %s5824_s3 = sld [smem:[#allocation22_spill]] }
 0x360   : > { %1941 = vmatpush1.bf16.msra.mxu1 %v4343_v1  ;;  %v4349_v5 = vld [vmem:[#allocation7 + $0x20] ss:$8 sps:$4 sm:$0xff]   ;;  %v4350_v6 = vld [vmem:[#allocation7 + $0x34] ss:$8 sps:$4 sm:$0xff]   ;;  %v4352_v7 = vld [vmem:[#allocation7 + $0x30] ss:$8 sps:$4 sm:$0xff]  }
 0x361   : > { %1942 = vmatprep.subr.bf16.mxu1 %v4344_v2  ;;  %v4353_v8 = vld [vmem:[#allocation7 + $0x44] ss:$8 sps:$4 sm:$0xff]   ;;  %v4355_v9 = vld [vmem:[#allocation7 + $0x40] ss:$8 sps:$4 sm:$0xff]   ;;  %v4356_v10 = vld [vmem:[#allocation7 + $0x54] ss:$8 sps:$4 sm:$0xff]  }
 0x362   : > { %v4358_v11 = vld [vmem:[#allocation7 + $0x50] ss:$8 sps:$4 sm:$0xff]   ;;  %v4359_v12 = vld [vmem:[#allocation7 + $0x64] ss:$8 sps:$4 sm:$0xff]   ;;  %v4361_v14 = vld [vmem:[#allocation7 + $0x60] ss:$8 sps:$4 sm:$0xff]  }
 0x363   : > { %v4362_v15 = vld [vmem:[#allocation7 + $0x74] ss:$8 sps:$4 sm:$0xff]   ;;  %v4364_v16 = vld [vmem:[#allocation7 + $0x70] ss:$8 sps:$4 sm:$0xff]   ;;  %v4365_v17 = vld [vmem:[#allocation7 + $0x84] ss:$8 sps:$4 sm:$0xff]  }
 0x364   : > { %1943 = vmatpush1.bf16.msra.mxu1 %v4346_v3  ;;  %v4367_v18 = vld [vmem:[#allocation7 + $0x80] ss:$8 sps:$4 sm:$0xff]   ;;  %v4368_v19 = vld [vmem:[#allocation7 + $0x94] ss:$8 sps:$4 sm:$0xff]   ;;  %v4370_v22 = vld [vmem:[#allocation7 + $0x90] ss:$8 sps:$4 sm:$0xff]  }
 0x365   : > { %1944 = vmatprep.subr.bf16.mxu1 %v4347_v4  ;;  %s3642_s16 = sshll.u32 %s5823_s9, 7  ;;  %v2070_v20 = vld [vmem:[#allocation2 + $0x8] sm:$0xff]  ;;  %v2072_v21 = vld [vmem:[#allocation2 + $0x18] sm:$0xff]  ;;  %v2069_v38 = vld [vmem:[#allocation2] sm:$0xff]  ;;  %s3766_s4 = sshll.u32 %s5823_s9, 5 }
 0x366   : > { %s5316_s12 = scalar_lea.vmem %s5258_s27, %s3642_s16 [#allocation4]  ;;  %3895 = vmatprep.subr.bf16.mxu0 %v2070_v20  ;;  %v4371_v23 = vld [vmem:[#allocation7 + $0xa4] ss:$8 sps:$4 sm:$0xff]   ;;  %v4373_v24 = vld [vmem:[#allocation7 + $0xa0] ss:$8 sps:$4 sm:$0xff]   ;;  %v4374_v25 = vld [vmem:[#allocation7 + $0xb4] ss:$8 sps:$4 sm:$0xff]  }
 0x367   : > { %v4391_v13 = vld [vmem:[%s5316_s12 + $0x4] ss:$8 sps:$4 sm:$0xff]   ;;  %3896 = vmatpush3.bf16.xpose.msra.mxu0 %v2070_v20  ;;  %v4376_v27 = vld [vmem:[#allocation7 + $0xb0] ss:$8 sps:$4 sm:$0xff]   ;;  %v4379_v29 = vld [vmem:[#allocation7 + $0xc0] ss:$8 sps:$4 sm:$0xff]  }
 0x368   : > { %1945 = vmatpush1.bf16.msra.mxu1 %v4349_v5  ;;  %1972 = vmatprep.mubr.bf16.mxu1 %v4391_v13  ;;  %v2074_v26 = vld [vmem:[#allocation2 + $0x28] sm:$0xff]  ;;  %v4380_v30 = vld [vmem:[#allocation7 + $0xd4] ss:$8 sps:$4 sm:$0xff]   ;;  %v4382_v32 = vld [vmem:[#allocation7 + $0xd0] ss:$8 sps:$4 sm:$0xff]   ;;  %s3744_s8 = sshll.u32 %s5824_s3, 6 }
 0x369   : > { %1946 = vmatprep.subr.bf16.mxu1 %v4350_v6  ;;  %3897 = vmatprep.subr.bf16.mxu0 %v2072_v21  ;;  %v4377_v28 = vld [vmem:[#allocation7 + $0xc4] ss:$8 sps:$4 sm:$0xff]   ;;  %v2076_v31 = vld [vmem:[#allocation2 + $0x38] sm:$0xff]  ;;  %v4385_v34 = vld [vmem:[#allocation7 + $0xe0] ss:$8 sps:$4 sm:$0xff]   ;;  %s3353_s19 = sadd.s32 %s3766_s4, %s3744_s8  ;;  %s3356_s24 = sshll.u32 %s5279_s13, 4  ;;  %s5704_s24 = int_to_ptr.vmem [resolvable:$true] %s3356_s24 }
 0x36a   : > { %v4383_v33 = vld [vmem:[#allocation7 + $0xe4] ss:$8 sps:$4 sm:$0xff]   ;;  %v4386_v35 = vld [vmem:[#allocation7 + $0xf4] ss:$8 sps:$4 sm:$0xff]   ;;  %v4388_v37 = vld [vmem:[#allocation7 + $0xf0] ss:$8 sps:$4 sm:$0xff]  }
 0x36b   : > { %v2078_v36 = vld [vmem:[#allocation2 + $0x48] sm:$0xff]  ;;  %v4392_v40 = vld [vmem:[%s5316_s12 + $0x14] ss:$8 sps:$4 sm:$0xff]   ;;  %v4394_v42 = vld [vmem:[%s5316_s12 + $0x10] ss:$8 sps:$4 sm:$0xff]   ;;  %s3745_s17 = sshll.u32 %s3353_s19, 6 }
 0x36c   : > { %1947 = vmatpush1.bf16.msra.mxu1 %v4352_v7  ;;  %v4389_v39 = vld [vmem:[%s5316_s12] ss:$8 sps:$4 sm:$0xff]   ;;  %v2080_v41 = vld [vmem:[#allocation2 + $0x58] sm:$0xff]  ;;  %v2071_v43 = vld [vmem:[#allocation2 + $0x10] sm:$0xff]  ;;  %s5825_s6 = sld [smem:[#allocation30_spill]]  ;;  %s5710_s9 = scalar_lea.sflag [#allocation6], %s354_s2 }
 0x36d   : > { %1948 = vmatprep.subr.bf16.mxu1 %v4353_v8  ;;  %v4395_v44 = vld [vmem:[%s5316_s12 + $0x24] ss:$8 sps:$4 sm:$0xff]   ;;  %v4397_v46 = vld [vmem:[%s5316_s12 + $0x20] ss:$8 sps:$4 sm:$0xff]   ;;  %v4398_v48 = vld [vmem:[%s5316_s12 + $0x34] ss:$8 sps:$4 sm:$0xff]  }
 0x36e   : > { %v2082_v45 = vld [vmem:[#allocation2 + $0x68] sm:$0xff]  ;;  %v2073_v47 = vld [vmem:[#allocation2 + $0x20] sm:$0xff]  ;;  %v4400_v49 = vld [vmem:[%s5316_s12 + $0x30] ss:$8 sps:$4 sm:$0xff]   ;;  %s4759_s16 = scalar_lea.vmem %s5704_s24, 2048  ;;  %p5826_p6 = scmp.ne.s32.totalorder %s5813_s18, 0 }
 0x36f   : > { %3898 = vmatpush3.bf16.xpose.msra.mxu0 %v2072_v21  ;;  %v2075_v50 = vld [vmem:[#allocation2 + $0x30] sm:$0xff]  ;;  %v4401_v51 = vld [vmem:[%s5316_s12 + $0x44] ss:$8 sps:$4 sm:$0xff]   ;;  %v4403_v52 = vld [vmem:[%s5316_s12 + $0x40] ss:$8 sps:$4 sm:$0xff]   ;;  %p4760_p1 = scmp.ne.s32.totalorder %s5704_s24, %s4759_s16 }
 0x370   : > { %1949 = vmatpush1.bf16.msra.mxu1 %v4355_v9  ;;  %3899 = vmatprep.subr.bf16.mxu0 %v2074_v26  ;;  %v2077_v53 = vld [vmem:[#allocation2 + $0x40] sm:$0xff]  ;;  %v4404_v54 = vld [vmem:[%s5316_s12 + $0x54] ss:$8 sps:$4 sm:$0xff]   ;;  %v4406_v55 = vld [vmem:[%s5316_s12 + $0x50] ss:$8 sps:$4 sm:$0xff]  }
 0x371   : > { %1950 = vmatprep.subr.bf16.mxu1 %v4356_v10  ;;  %v2079_v56 = vld [vmem:[#allocation2 + $0x50] sm:$0xff]  ;;  %v4407_v57 = vld [vmem:[%s5316_s12 + $0x64] ss:$8 sps:$4 sm:$0xff]   ;;  %v4409_v58 = vld [vmem:[%s5316_s12 + $0x60] ss:$8 sps:$4 sm:$0xff]   ;;  %p4761_p9 = pnand %p4760_p1, %p5826_p6 }
 0x372   : > { %v2081_v59 = vld [vmem:[#allocation2 + $0x60] sm:$0xff]  ;;  %v4410_v60 = vld [vmem:[%s5316_s12 + $0x74] ss:$8 sps:$4 sm:$0xff]   ;;  %v4412_v61 = vld [vmem:[%s5316_s12 + $0x70] ss:$8 sps:$4 sm:$0xff]   ;;  %s5702_s28 = scalar_lea.hbm %s5825_s6, %s3745_s17  ;;  %s4904_s12 = smov [#allocation15]  }
 0x373   : > { %v2083_v62 = vld [vmem:[#allocation2 + $0x70] sm:$0xff]  ;;  %v2084_v63 = vld [vmem:[#allocation2 + $0x78] sm:$0xff]  ;;  %p4762_p11 = pneg %p4761_p9  ;;  %s4763_s3 = sshll.u32 %s4904_s12, 4  ;;  %s4764_s3 = int_to_ptr.vmem [resolvable:$false] %s4763_s3 }
 0x374   : > { %1951 = vmatpush1.bf16.msra.mxu1 %v4358_v11  ;;  %s4765_s4 = scalar_lea.vmem %s4764_s3, 4096  ;;  %p4766_p8 = scmp.lt.s32.totalorder %s5704_s24, %s4764_s3 }
 0x375   : > { %1952 = vmatprep.subr.bf16.mxu1 %v4359_v12  ;;  %p4767_p13 = scmp.lt.s32.totalorder %s4765_s4, %s4759_s16 }
 0x377   : > { %3900 = vmatpush3.bf16.xpose.msra.mxu0 %v2074_v26  ;;  %p4768_p2 = por %p4767_p13, %p4766_p8 }
 0x378   : > { %1953 = vmatpush1.bf16.msra.mxu1 %v4361_v14  ;;  %3901 = vmatprep.subr.bf16.mxu0 %v2076_v31 }
 0x379   : > { %1954 = vmatprep.subr.bf16.mxu1 %v4362_v15  ;;  %p4769_p7 = pnand %p4768_p2, %p4762_p11 }
 0x37c   : > { %1955 = vmatpush1.bf16.msra.mxu1 %v4364_v16 }
 0x37d   : > { %1956 = vmatprep.subr.bf16.mxu1 %v4365_v17 }
 0x37f   : > { %3902 = vmatpush3.bf16.xpose.msra.mxu0 %v2076_v31 }
 0x380   : > { %1957 = vmatpush1.bf16.msra.mxu1 %v4367_v18  ;;  %3903 = vmatprep.subr.bf16.mxu0 %v2078_v36 }
 0x381   : > { %1958 = vmatprep.subr.bf16.mxu1 %v4368_v19 }
 0x384   : > { %1959 = vmatpush1.bf16.msra.mxu1 %v4370_v22 }
 0x385   : > { %1960 = vmatprep.subr.bf16.mxu1 %v4371_v23 }
 0x387   : > { %3904 = vmatpush3.bf16.xpose.msra.mxu0 %v2078_v36 }
 0x388   : > { %1961 = vmatpush1.bf16.msra.mxu1 %v4373_v24  ;;  %3905 = vmatprep.subr.bf16.mxu0 %v2080_v41 }
 0x389   : > { %1962 = vmatprep.subr.bf16.mxu1 %v4374_v25 }
 0x38c   : > { %1963 = vmatpush1.bf16.msra.mxu1 %v4376_v27 }
 0x38d   : > { %1964 = vmatprep.subr.bf16.mxu1 %v4377_v28 }
 0x38f   : > { %3906 = vmatpush3.bf16.xpose.msra.mxu0 %v2080_v41 }
 0x390   : > { %1965 = vmatpush1.bf16.msra.mxu1 %v4379_v29  ;;  %3907 = vmatprep.subr.bf16.mxu0 %v2082_v45 }
 0x391   : > { %1966 = vmatprep.subr.bf16.mxu1 %v4380_v30 }
 0x394   : > { %1967 = vmatpush1.bf16.msra.mxu1 %v4382_v32 }
 0x395   : > { %1968 = vmatprep.subr.bf16.mxu1 %v4383_v33 }
 0x397   : > { %3908 = vmatpush3.bf16.xpose.msra.mxu0 %v2082_v45 }
 0x398   : > { %1969 = vmatpush1.bf16.msra.mxu1 %v4385_v34  ;;  %3909 = vmatprep.subr.bf16.mxu0 %v2084_v63 }
 0x399   : > { %1970 = vmatprep.subr.bf16.mxu1 %v4386_v35 }
 0x39c   : > { %1971 = vmatpush1.bf16.msra.mxu1 %v4388_v37 }
 0x39d   : > { %3831 = vmatprep.subr.bf16.mxu1 %v2069_v38 }
 0x39f   : > { %1973 = vmatmul.mubr.bf16.vlgmr.msra.gmra.mrb[0].mxu1 %v4389_v39  ;;  %3910 = vmatpush3.bf16.xpose.msra.mxu0 %v2084_v63 }
 0x3a0   : > { %1982 = vmatprep.mubr.bf16.mxu1 %v4392_v40 }
 0x3a5   : > { %3832 = vmatpush3.bf16.xpose.msra.mxu1 %v2069_v38 }
 0x3a6   : > { %3833 = vmatprep.subr.bf16.mxu1 %v2071_v43 }
 0x3a7   : > { %1983 = vmatmul.mubr.bf16.gmra.mrb[4].mxu1 %v4394_v42 }
 0x3a8   : > { %1992 = vmatprep.mubr.bf16.mxu1 %v4395_v44 }
 0x3ad   : > { %3834 = vmatpush3.bf16.xpose.msra.mxu1 %v2071_v43 }
 0x3ae   : > { %3835 = vmatprep.subr.bf16.mxu1 %v2073_v47 }
 0x3af   : > { %1993 = vmatmul.mubr.bf16.gmra.mrb[8].mxu1 %v4397_v46 }
 0x3b0   : > { %2002 = vmatprep.mubr.bf16.mxu1 %v4398_v48 }
 0x3b5   : > { %3836 = vmatpush3.bf16.xpose.msra.mxu1 %v2073_v47 }
 0x3b6   : > { %3837 = vmatprep.subr.bf16.mxu1 %v2075_v50 }
 0x3b7   : > { %2003 = vmatmul.mubr.bf16.gmra.mrb[12].mxu1 %v4400_v49 }
 0x3b8   : > { %2012 = vmatprep.mubr.bf16.mxu1 %v4401_v51 }
 0x3bd   : > { %3838 = vmatpush3.bf16.xpose.msra.mxu1 %v2075_v50 }
 0x3be   : > { %3839 = vmatprep.subr.bf16.mxu1 %v2077_v53 }
 0x3bf   : > { %2013 = vmatmul.mubr.bf16.gmra.mrb[16].mxu1 %v4403_v52 }
 0x3c0   : > { %2022 = vmatprep.mubr.bf16.mxu1 %v4404_v54 }
 0x3c5   : > { %3840 = vmatpush3.bf16.xpose.msra.mxu1 %v2077_v53 }
 0x3c6   : > { %3841 = vmatprep.subr.bf16.mxu1 %v2079_v56 }
 0x3c7   : > { %2023 = vmatmul.mubr.bf16.gmra.mrb[20].mxu1 %v4406_v55 }
 0x3c8   : > { %2032 = vmatprep.mubr.bf16.mxu1 %v4407_v57 }
 0x3cd   : > { %3842 = vmatpush3.bf16.xpose.msra.mxu1 %v2079_v56 }
 0x3ce   : > { %3843 = vmatprep.subr.bf16.mxu1 %v2081_v59 }
 0x3cf   : > { %2033 = vmatmul.mubr.bf16.gmra.mrb[24].mxu1 %v4409_v58 }
 0x3d0   : > { %2042 = vmatprep.mubr.bf16.mxu1 %v4410_v60 }
 0x3d5   : > { %3844 = vmatpush3.bf16.xpose.msra.mxu1 %v2081_v59 }
 0x3d6   : > { %3845 = vmatprep.subr.bf16.mxu1 %v2083_v62 }
 0x3d7   : > { %2043 = vmatmul.mubr.bf16.gmra.mrb[28].mxu1 %v4412_v61 }
 0x3dd   : > { %3846 = vmatpush3.bf16.xpose.msra.mxu1 %v2083_v62 }
 0x472   : > { %v1974_v0 = vpop.f32.mrb[0].mxu1 }
 0x473   : > { %v1976_v1 = vpop.f32.mrb[1].mxu1 }
 0x474   : > { %v1978_v2 = vpop.f32.mrb[2].mxu1 }
 0x475   : > { %v2053_v3 = vpack.c.bf16 %v1978_v2, %v1974_v0  ;;  %v1980_v4 = vpop.f32.mrb[3].mxu1 }
 0x476   : > { %v2054_v5 = vpack.c.bf16 %v1980_v4, %v1976_v1 }
 0x477   : > { %3847 = vmatprep.mubr.bf16.mxu1 %v2053_v3 }
 0x478   : > { %3911 = vmatprep.mubr.bf16.mxu0 %v2054_v5 }
 0x47a   : > { %v1984_v6 = vpop.f32.mrb[4].mxu1 }
 0x47b   : > { %v1986_v7 = vpop.f32.mrb[5].mxu1 }
 0x47c   : > { %v1988_v8 = vpop.f32.mrb[6].mxu1 }
 0x47d   : > { %v2055_v9 = vpack.c.bf16 %v1988_v8, %v1984_v6  ;;  %v1990_v10 = vpop.f32.mrb[7].mxu1 }
 0x47e   : > { %v2056_v11 = vpack.c.bf16 %v1990_v10, %v1986_v7 }
 0x47f   : > { %3848 = vmatmul.mubr.bf16.vlgmr.msra.gmra.mrb[32].mxu1 %v2055_v9 }
 0x480   : > { %3912 = vmatmul.mubr.bf16.vlgmr.msra.gmra.mrb[0].mxu0 %v2056_v11 }
 0x482   : > { %v1994_v12 = vpop.f32.mrb[8].mxu1 }
 0x483   : > { %v1996_v13 = vpop.f32.mrb[9].mxu1 }
 0x484   : > { %v1998_v14 = vpop.f32.mrb[10].mxu1 }
 0x485   : > { %v2057_v15 = vpack.c.bf16 %v1998_v14, %v1994_v12  ;;  %v2000_v16 = vpop.f32.mrb[11].mxu1 }
 0x486   : > { %v2058_v17 = vpack.c.bf16 %v2000_v16, %v1996_v13  ;;  %v2085_v16 = vld [vmem:[#allocation3] sm:$0xff] }
 0x487   : > { %3851 = vmatprep.mubr.bf16.mxu1 %v2057_v15  ;;  %3863 = vmatprep.subr.bf16.mxu1 %v2085_v16 }
 0x488   : > { %3915 = vmatprep.mubr.bf16.mxu0 %v2058_v17  ;;  %v2087_v17 = vld [vmem:[#allocation3 + $0x10] sm:$0xff]  ;;  %3864 = vmatpush3.bf16.msra.mxu1 %v2085_v16 }
 0x489   : > { %3865 = vmatprep.subr.bf16.mxu1 %v2087_v17 }
 0x48a   : > { %v2004_v18 = vpop.f32.mrb[12].mxu1 }
 0x48b   : > { %v2006_v19 = vpop.f32.mrb[13].mxu1 }
 0x48c   : > { %v2008_v20 = vpop.f32.mrb[14].mxu1  ;;  %3866 = vmatpush3.bf16.msra.mxu1 %v2087_v17 }
 0x48d   : > { %v2059_v21 = vpack.c.bf16 %v2008_v20, %v2004_v18  ;;  %v2010_v22 = vpop.f32.mrb[15].mxu1  ;;  %v2089_v18 = vld [vmem:[#allocation3 + $0x20] sm:$0xff] }
 0x48e   : > { %v2060_v23 = vpack.c.bf16 %v2010_v22, %v2006_v19  ;;  %3867 = vmatprep.subr.bf16.mxu1 %v2089_v18 }
 0x48f   : > { %3852 = vmatmul.mubr.bf16.gmra.mrb[36].mxu1 %v2059_v21 }
 0x490   : > { %3916 = vmatmul.mubr.bf16.gmra.mrb[4].mxu0 %v2060_v23  ;;  %3868 = vmatpush3.bf16.msra.mxu1 %v2089_v18 }
 0x492   : > { %v2014_v24 = vpop.f32.mrb[16].mxu1 }
 0x493   : > { %v2016_v25 = vpop.f32.mrb[17].mxu1 }
 0x494   : > { %v2018_v26 = vpop.f32.mrb[18].mxu1 }
 0x495   : > { %v2061_v27 = vpack.c.bf16 %v2018_v26, %v2014_v24  ;;  %v2020_v28 = vpop.f32.mrb[19].mxu1 }
 0x496   : > { %v2062_v29 = vpack.c.bf16 %v2020_v28, %v2016_v25 }
 0x497   : > { %3855 = vmatprep.mubr.bf16.mxu1 %v2061_v27 }
 0x498   : > { %3919 = vmatprep.mubr.bf16.mxu0 %v2062_v29 }
 0x49a   : > { %v2024_v30 = vpop.f32.mrb[20].mxu1 }
 0x49b   : > { %v2026_v31 = vpop.f32.mrb[21].mxu1 }
 0x49c   : > { %v2028_v32 = vpop.f32.mrb[22].mxu1 }
 0x49d   : > { %v2063_v33 = vpack.c.bf16 %v2028_v32, %v2024_v30  ;;  %v2030_v34 = vpop.f32.mrb[23].mxu1 }
 0x49e   : > { %v2064_v35 = vpack.c.bf16 %v2030_v34, %v2026_v31 }
 0x49f   : > { %3856 = vmatmul.mubr.bf16.gmra.mrb[40].mxu1 %v2063_v33 }
 0x4a0   : > { %3920 = vmatmul.mubr.bf16.gmra.mrb[8].mxu0 %v2064_v35 }
 0x4a2   : > { %v2034_v36 = vpop.f32.mrb[24].mxu1 }
 0x4a3   : > { %v2036_v37 = vpop.f32.mrb[25].mxu1 }
 0x4a4   : > { %v2038_v38 = vpop.f32.mrb[26].mxu1 }
 0x4a5   : > { %v2065_v39 = vpack.c.bf16 %v2038_v38, %v2034_v36  ;;  %v2040_v40 = vpop.f32.mrb[27].mxu1 }
 0x4a6   : > { %v2066_v41 = vpack.c.bf16 %v2040_v40, %v2036_v37 }
 0x4a7   : > { %3859 = vmatprep.mubr.bf16.mxu1 %v2065_v39 }
 0x4a8   : > { %3923 = vmatprep.mubr.bf16.mxu0 %v2066_v41 }
 0x4aa   : > { %v2044_v42 = vpop.f32.mrb[28].mxu1 }
 0x4ab   : > { %v2046_v43 = vpop.f32.mrb[29].mxu1 }
 0x4ac   : > { %v2048_v44 = vpop.f32.mrb[30].mxu1 }
 0x4ad   : > { %v2067_v45 = vpack.c.bf16 %v2048_v44, %v2044_v42  ;;  %v2050_v46 = vpop.f32.mrb[31].mxu1 }
 0x4ae   : > { %v2068_v47 = vpack.c.bf16 %v2050_v46, %v2046_v43 }
 0x4af   : > { %3860 = vmatmul.mubr.bf16.gmra.mrb[44].mxu1 %v2067_v45 }
 0x4b0   : > { %3924 = vmatmul.mubr.bf16.gmra.mrb[12].mxu0 %v2068_v47  ;;  %v2091_v47 = vld [vmem:[#allocation3 + $0x30] sm:$0xff] }
 0x4b1   : > { %3869 = vmatprep.subr.bf16.mxu1 %v2091_v47 }
 0x4b2   : > { %3870 = vmatpush3.bf16.msra.mxu1 %v2091_v47 }
 0x552   : > { %v5334_v48 = vpop.f32.mrb[32].mxu1 }
 0x553   : > { %v5336_v49 = vpop.f32.mrb[0].mxu0  ;;  %2234 = vmax.xlane.f32.xlu1 %v5334_v48  ;;  %v5339_v50 = vpop.f32.mrb[33].mxu1 }
 0x554   : > { %v5341_v51 = vpop.f32.mrb[1].mxu0  ;;  %2230 = vmax.xlane.f32.xlu0 %v5339_v50  ;;  %v5344_v52 = vpop.f32.mrb[34].mxu1 }
 0x555   : > { %v5346_v53 = vpop.f32.mrb[35].mxu1  ;;  %v5348_v54 = vpop.f32.mrb[2].mxu0 }
 0x556   : > { %v5350_v55 = vpop.f32.mrb[3].mxu0 }
 0x557   : > { %2236 = vmax.xlane.f32.xlu1 %v5344_v52 }
 0x558   : > { %2232 = vmax.xlane.f32.xlu0 %v5346_v53 }
 0x562   : > { %v5354_v56 = vpop.f32.mrb[36].mxu1 }
 0x563   : > { %v5356_v57 = vpop.f32.mrb[37].mxu1  ;;  %v5358_v58 = vpop.f32.mrb[4].mxu0 }
 0x564   : > { %v5360_v59 = vpop.f32.mrb[5].mxu0  ;;  %2238 = vmax.xlane.f32.xlu0 %v5356_v57  ;;  %v5363_v60 = vpop.f32.mrb[38].mxu1 }
 0x565   : > { %v5365_v61 = vpop.f32.mrb[39].mxu1  ;;  %v5367_v62 = vpop.f32.mrb[6].mxu0 }
 0x566   : > { %v5369_v63 = vpop.f32.mrb[7].mxu0  ;;  %2240 = vmax.xlane.f32.xlu1 %v5365_v61 }
 0x568   : > { %2242 = vmax.xlane.f32.xlu0 %v5354_v56 }
 0x56a   : > { %2244 = vmax.xlane.f32.xlu1 %v5363_v60 }
 0x572   : > { %v5374_v0 = vpop.f32.mrb[40].mxu1 }
 0x573   : > { %v5376_v1 = vpop.f32.mrb[41].mxu1  ;;  %v5378_v2 = vpop.f32.mrb[8].mxu0 }
 0x574   : > { %v5380_v3 = vpop.f32.mrb[9].mxu0  ;;  %2246 = vmax.xlane.f32.xlu0 %v5376_v1  ;;  %v5383_v4 = vpop.f32.mrb[42].mxu1 }
 0x575   : > { %v5385_v5 = vpop.f32.mrb[43].mxu1  ;;  %v5387_v6 = vpop.f32.mrb[10].mxu0 }
 0x576   : > { %v5389_v7 = vpop.f32.mrb[11].mxu0  ;;  %2248 = vmax.xlane.f32.xlu1 %v5385_v5 }
 0x578   : > { %2250 = vmax.xlane.f32.xlu0 %v5374_v0 }
 0x57a   : > { %2252 = vmax.xlane.f32.xlu1 %v5383_v4 }
 0x582   : > { %v5394_v8 = vpop.f32.mrb[44].mxu1 }
 0x583   : > { %v5396_v9 = vpop.f32.mrb[45].mxu1  ;;  %v5398_v10 = vpop.f32.mrb[12].mxu0 }
 0x584   : > { %2254 = vmax.xlane.f32.xlu0 %v5396_v9  ;;  %v5401_v11 = vpop.f32.mrb[46].mxu1  ;;  %v5403_v12 = vpop.f32.mrb[13].mxu0 }
 0x585   : > { %v5405_v13 = vpop.f32.mrb[47].mxu1  ;;  %v5407_v14 = vpop.f32.mrb[14].mxu0 }
 0x586   : > { %2256 = vmax.xlane.f32.xlu1 %v5405_v13  ;;  %v5410_v15 = vpop.f32.mrb[15].mxu0 }
 0x588   : > { %2258 = vmax.xlane.f32.xlu0 %v5394_v8 }
 0x58a   : > { %2260 = vmax.xlane.f32.xlu1 %v5401_v11 }
 0x58c   : > { %2584 = vmax.xlane.f32.xlu0 %v5341_v51 }
 0x58e   : > { %2586 = vmax.xlane.f32.xlu1 %v5350_v55 }
 0x590   : > { %2588 = vmax.xlane.f32.xlu0 %v5336_v49 }
 0x592   : > { %2590 = vmax.xlane.f32.xlu1 %v5348_v54 }
 0x594   : > { %2592 = vmax.xlane.f32.xlu0 %v5360_v59 }
 0x596   : > { %2594 = vmax.xlane.f32.xlu1 %v5369_v63 }
 0x598   : > { %2596 = vmax.xlane.f32.xlu0 %v5358_v58 }
 0x59a   : > { %2598 = vmax.xlane.f32.xlu1 %v5367_v62 }
 0x59c   : > { %2600 = vmax.xlane.f32.xlu0 %v5380_v3 }
 0x59e   : > { %2602 = vmax.xlane.f32.xlu1 %v5389_v7 }
 0x5a0   : > { %2604 = vmax.xlane.f32.xlu0 %v5378_v2 }
 0x5a2   : > { %2606 = vmax.xlane.f32.xlu1 %v5387_v6 }
 0x5a4   : > { %2608 = vmax.xlane.f32.xlu0 %v5403_v12 }
 0x5a6   : > { %2614 = vmax.xlane.f32.xlu1 %v5407_v14 }
 0x5a8   : > { %2612 = vmax.xlane.f32.xlu0 %v5398_v10 }
 0x5aa   : > { %2610 = vmax.xlane.f32.xlu1 %v5410_v15 }
 0x5e0   : > { %v2235_v19 = vpop.xlane.xlu1 %2234 }
 0x5e1   : > { %v2264_v20 = vsub.f32 %v5334_v48, %v2235_v19  ;;  %v2231_v21 = vpop.xlane.xlu0 %2230 }
 0x5e2   : > { %v2262_v22 = vsub.f32 %v5339_v50, %v2231_v21 }
 0x5e3   : > { %v2282_v25 = vmul.f32 1.442695, %v2264_v20  ;;  %v2093_v20 = vld [vmem:[#allocation3 + $0x40] sm:$0xff] }
 0x5e4   : > { %v2278_v23 = vmul.f32 1.442695, %v2262_v22  ;;  %v2237_v24 = vpop.xlane.xlu1 %2236  ;;  %3871 = vmatprep.subr.bf16.mxu1 %v2093_v20 }
 0x5e5   : > { %v2233_v26 = vpop.xlane.xlu0 %2232  ;;  %v2265_v27 = vsub.f32 %v5344_v52, %v2237_v24  ;;  %3872 = vmatpush3.bf16.msra.mxu1 %v2093_v20  ;;  %v2097_v24 = vld [vmem:[#allocation3 + $0x60] sm:$0xff] }
 0x5e6   : > { %4461 = vpow2.f32 %v2278_v23  ;;  %v2263_v28 = vsub.f32 %v5346_v53, %v2233_v26  ;;  %v2095_v23 = vld [vmem:[#allocation3 + $0x50] sm:$0xff] }
 0x5e7   : > { %4463 = vpow2.f32 %v2282_v25  ;;  %v2284_v30 = vmul.f32 1.442695, %v2265_v27  ;;  %3873 = vmatprep.subr.bf16.mxu1 %v2095_v23 }
 0x5e8   : > { %v2280_v29 = vmul.f32 1.442695, %v2263_v28 }
 0x5e9   : > { %3874 = vmatpush3.bf16.msra.mxu1 %v2095_v23 }
 0x5ea   : > { %4465 = vpow2.f32 %v2280_v29  ;;  %3875 = vmatprep.subr.bf16.mxu1 %v2097_v24 }
 0x5eb   : > { %4467 = vpow2.f32 %v2284_v30 }
 0x5ed   : > { %3876 = vmatpush3.bf16.msra.mxu1 %v2097_v24 }
 0x5f0   : > { %v5434_v31 = vpop.eup %4461 }
 0x5f1   : > { %v2239_v32 = vpop.xlane.xlu0 %2238  ;;  %2310 = vadd.xlane.f32.xlu0 %v5434_v31  ;;  %v5438_v34 = vpop.eup %4463 }
 0x5f2   : > { %v2266_v33 = vsub.f32 %v5356_v57, %v2239_v32 }
 0x5f3   : > { %v2241_v35 = vpop.xlane.xlu1 %2240 }
 0x5f4   : > { %v5440_v36 = vpop.eup %4465  ;;  %v2286_v37 = vmul.f32 1.442695, %v2266_v33  ;;  %v2267_v38 = vsub.f32 %v5365_v61, %v2241_v35 }
 0x5f5   : > { %v2243_v39 = vpop.xlane.xlu0 %2242  ;;  %2314 = vadd.xlane.f32.xlu0 %v5438_v34  ;;  %2312 = vadd.xlane.f32.xlu1 %v5440_v36  ;;  %v5446_v43 = vpop.eup %4467 }
 0x5f6   : > { %4469 = vpow2.f32 %v2286_v37  ;;  %v2288_v40 = vmul.f32 1.442695, %v2267_v38  ;;  %v2268_v41 = vsub.f32 %v5354_v56, %v2243_v39 }
 0x5f7   : > { %v2245_v42 = vpop.xlane.xlu1 %2244 }
 0x5f8   : > { %4471 = vpow2.f32 %v2288_v40  ;;  %v2290_v44 = vmul.f32 1.442695, %v2268_v41  ;;  %v2269_v45 = vsub.f32 %v5363_v60, %v2245_v42 }
 0x5f9   : > { %2316 = vadd.xlane.f32.xlu1 %v5446_v43 }
 0x5fa   : > { %4473 = vpow2.f32 %v2290_v44  ;;  %v2292_v46 = vmul.f32 1.442695, %v2269_v45 }
 0x5fc   : > { %4475 = vpow2.f32 %v2292_v46 }
 0x600   : > { %v5450_v48 = vpop.eup %4469 }
 0x601   : > { %v2247_v50 = vpop.xlane.xlu0 %2246  ;;  %2318 = vadd.xlane.f32.xlu0 %v5450_v48 }
 0x602   : > { %v5453_v52 = vpop.eup %4471  ;;  %v2270_v53 = vsub.f32 %v5376_v1, %v2247_v50 }
 0x603   : > { %v2249_v56 = vpop.xlane.xlu1 %2248  ;;  %2320 = vadd.xlane.f32.xlu1 %v5453_v52 }
 0x604   : > { %v5457_v57 = vpop.eup %4473  ;;  %v2294_v60 = vmul.f32 1.442695, %v2270_v53  ;;  %v2271_v61 = vsub.f32 %v5385_v5, %v2249_v56 }
 0x605   : > { %v2251_v16 = vpop.xlane.xlu0 %2250  ;;  %2322 = vadd.xlane.f32.xlu0 %v5457_v57 }
 0x606   : > { %v5461_v17 = vpop.eup %4475  ;;  %4477 = vpow2.f32 %v2294_v60  ;;  %v2296_v18 = vmul.f32 1.442695, %v2271_v61  ;;  %v2272_v19 = vsub.f32 %v5374_v0, %v2251_v16 }
 0x607   : > { %v2253_v21 = vpop.xlane.xlu1 %2252  ;;  %2324 = vadd.xlane.f32.xlu1 %v5461_v17 }
 0x608   : > { %4479 = vpow2.f32 %v2296_v18  ;;  %v2298_v1 = vmul.f32 1.442695, %v2272_v19  ;;  %v2273_v22 = vsub.f32 %v5383_v4, %v2253_v21  ;;  %v2099_v4 = vld [vmem:[#allocation3 + $0x70] sm:$0xff] }
 0x609   : > { %3877 = vmatprep.subr.bf16.mxu1 %v2099_v4 }
 0x60a   : > { %4481 = vpow2.f32 %v2298_v1  ;;  %v2300_v5 = vmul.f32 1.442695, %v2273_v22  ;;  %3878 = vmatpush3.bf16.msra.mxu1 %v2099_v4 }
 0x60c   : > { %4483 = vpow2.f32 %v2300_v5 }
 0x610   : > { %v5466_v25 = vpop.eup %4477 }
 0x611   : > { %v2255_v0 = vpop.xlane.xlu0 %2254  ;;  %2326 = vadd.xlane.f32.xlu0 %v5466_v25 }
 0x612   : > { %v5469_v26 = vpop.eup %4479  ;;  %v2274_v27 = vsub.f32 %v5396_v9, %v2255_v0 }
 0x613   : > { %v2257_v28 = vpop.xlane.xlu1 %2256  ;;  %2328 = vadd.xlane.f32.xlu1 %v5469_v26 }
 0x614   : > { %v5473_v29 = vpop.eup %4481  ;;  %v2302_v30 = vmul.f32 1.442695, %v2274_v27  ;;  %v2275_v32 = vsub.f32 %v5405_v13, %v2257_v28 }
 0x615   : > { %v2259_v33 = vpop.xlane.xlu0 %2258  ;;  %2330 = vadd.xlane.f32.xlu0 %v5473_v29 }
 0x616   : > { %v5477_v35 = vpop.eup %4483  ;;  %4485 = vpow2.f32 %v2302_v30  ;;  %v2304_v37 = vmul.f32 1.442695, %v2275_v32  ;;  %v2276_v9 = vsub.f32 %v5394_v8, %v2259_v33 }
 0x617   : > { %v2261_v38 = vpop.xlane.xlu1 %2260  ;;  %2332 = vadd.xlane.f32.xlu1 %v5477_v35 }
 0x618   : > { %4487 = vpow2.f32 %v2304_v37  ;;  %v2306_v39 = vmul.f32 1.442695, %v2276_v9  ;;  %v2277_v40 = vsub.f32 %v5401_v11, %v2261_v38 }
 0x619   : > { %v2585_v41 = vpop.xlane.xlu0 %2584 }
 0x61a   : > { %4489 = vpow2.f32 %v2306_v39  ;;  %v2308_v13 = vmul.f32 1.442695, %v2277_v40  ;;  %v2616_v42 = vsub.f32 %v5341_v51, %v2585_v41 }
 0x61b   : > { %v2587_v44 = vpop.xlane.xlu1 %2586 }
 0x61c   : > { %4491 = vpow2.f32 %v2308_v13  ;;  %v2632_v45 = vmul.f32 1.442695, %v2616_v42  ;;  %v2617_v46 = vsub.f32 %v5350_v55, %v2587_v44 }
 0x61d   : > { %v2589_v47 = vpop.xlane.xlu0 %2588 }
 0x61e   : > { %4493 = vpow2.f32 %v2632_v45  ;;  %v2634_v8 = vmul.f32 1.442695, %v2617_v46  ;;  %v2618_v50 = vsub.f32 %v5336_v49, %v2589_v47 }
 0x61f   : > { %v2591_v53 = vpop.xlane.xlu1 %2590 }
 0x620   : > { %v5485_v56 = vpop.eup %4485  ;;  %4495 = vpow2.f32 %v2634_v8  ;;  %v2636_v11 = vmul.f32 1.442695, %v2618_v50  ;;  %v2619_v60 = vsub.f32 %v5348_v54, %v2591_v53  ;;  %v5497_v54 = vld [vmem:[#allocation3 + $0x8] sm:$0xff] }
 0x621   : > { %v2593_v61 = vpop.xlane.xlu0 %2592  ;;  %2334 = vadd.xlane.f32.xlu0 %v5485_v56  ;;  %3927 = vmatprep.subr.bf16.mxu1 %v5497_v54 }
 0x622   : > { %v5489_v51 = vpop.eup %4487  ;;  %4497 = vpow2.f32 %v2636_v11  ;;  %v2638_v16 = vmul.f32 1.442695, %v2619_v60  ;;  %v2620_v55 = vsub.f32 %v5360_v59, %v2593_v61 }
 0x623   : > { %v2595_v18 = vpop.xlane.xlu1 %2594  ;;  %2336 = vadd.xlane.f32.xlu1 %v5489_v51 }
 0x624   : > { %v5493_v49 = vpop.eup %4489  ;;  %4499 = vpow2.f32 %v2638_v16  ;;  %v2640_v19 = vmul.f32 1.442695, %v2620_v55  ;;  %v2621_v20 = vsub.f32 %v5369_v63, %v2595_v18 }
 0x625   : > { %v2597_v21 = vpop.xlane.xlu0 %2596  ;;  %2338 = vadd.xlane.f32.xlu0 %v5493_v49 }
 0x626   : > { %v5499_v1 = vpop.eup %4491  ;;  %4501 = vpow2.f32 %v2640_v19  ;;  %v2642_v22 = vmul.f32 1.442695, %v2621_v20  ;;  %v2622_v59 = vsub.f32 %v5358_v58, %v2597_v21 }
 0x627   : > { %v2599_v5 = vpop.xlane.xlu1 %2598  ;;  %2340 = vadd.xlane.f32.xlu1 %v5499_v1 }
 0x628   : > { %v5504_v23 = vpop.eup %4493  ;;  %4503 = vpow2.f32 %v2642_v22  ;;  %v2644_v63 = vmul.f32 1.442695, %v2622_v59  ;;  %v2623_v24 = vsub.f32 %v5367_v62, %v2599_v5 }
 0x629   : > { %v2601_v0 = vpop.xlane.xlu0 %2600  ;;  %2664 = vadd.xlane.f32.xlu0 %v5504_v23 }
 0x62a   : > { %v5508_v27 = vpop.eup %4495  ;;  %4505 = vpow2.f32 %v2644_v63  ;;  %v2646_v4 = vmul.f32 1.442695, %v2623_v24  ;;  %v2624_v58 = vsub.f32 %v5380_v3, %v2601_v0 }
 0x62b   : > { %v2603_v28 = vpop.xlane.xlu1 %2602  ;;  %2666 = vadd.xlane.f32.xlu1 %v5508_v27 }
 0x62c   : > { %v5512_v30 = vpop.eup %4497  ;;  %4507 = vpow2.f32 %v2646_v4  ;;  %v2648_v32 = vmul.f32 1.442695, %v2624_v58  ;;  %v2625_v33 = vsub.f32 %v5389_v7, %v2603_v28 }
 0x62d   : > { %v2605_v37 = vpop.xlane.xlu0 %2604  ;;  %2668 = vadd.xlane.f32.xlu0 %v5512_v30 }
 0x62e   : > { %v5516_v62 = vpop.eup %4499  ;;  %4509 = vpow2.f32 %v2648_v32  ;;  %v2650_v9 = vmul.f32 1.442695, %v2625_v33  ;;  %v2626_v38 = vsub.f32 %v5378_v2, %v2605_v37 }
 0x62f   : > { %v2607_v39 = vpop.xlane.xlu1 %2606  ;;  %2670 = vadd.xlane.f32.xlu1 %v5516_v62 }
 0x630   : > { %v5520_v3 = vpop.eup %4501  ;;  %4511 = vpow2.f32 %v2650_v9  ;;  %v2652_v40 = vmul.f32 1.442695, %v2626_v38  ;;  %v2627_v41 = vsub.f32 %v5387_v6, %v2607_v39 }
 0x631   : > { %2672 = vadd.xlane.f32.xlu0 %v5520_v3  ;;  %v2609_v7 = vpop.xlane.xlu0 %2608 }
 0x632   : > { %v5524_v13 = vpop.eup %4503  ;;  %4513 = vpow2.f32 %v2652_v40  ;;  %v2654_v42 = vmul.f32 1.442695, %v2627_v41  ;;  %v2628_v44 = vsub.f32 %v5403_v12, %v2609_v7  ;;  %v2088_v7 = vld [vmem:[#allocation3 + $0x18] sm:$0xff] }
 0x633   : > { %v2615_v45 = vpop.xlane.xlu1 %2614  ;;  %2674 = vadd.xlane.f32.xlu1 %v5524_v13 }
 0x634   : > { %v5528_v2 = vpop.eup %4505  ;;  %4515 = vpow2.f32 %v2654_v42  ;;  %v2656_v46 = vmul.f32 1.442695, %v2628_v44  ;;  %v2631_v12 = vsub.f32 %v5407_v14, %v2615_v45  ;;  %v2092_v45 = vld [vmem:[#allocation3 + $0x38] sm:$0xff] }
 0x635   : > { %2676 = vadd.xlane.f32.xlu0 %v5528_v2  ;;  %v2613_v47 = vpop.xlane.xlu0 %2612 }
 0x636   : > { %v5531_v6 = vpop.eup %4507  ;;  %4517 = vpow2.f32 %v2656_v46  ;;  %v2630_v8 = vsub.f32 %v5398_v10, %v2613_v47  ;;  %v2662_v10 = vmul.f32 1.442695, %v2631_v12 }
 0x637   : > { %2678 = vadd.xlane.f32.xlu1 %v5531_v6  ;;  %v2611_v50 = vpop.xlane.xlu1 %2610 }
 0x638   : > { %v5535_v53 = vpop.eup %4509  ;;  %v2660_v11 = vmul.f32 1.442695, %v2630_v8  ;;  %v2629_v60 = vsub.f32 %v5410_v15, %v2611_v50 }
 0x639   : > { %2680 = vadd.xlane.f32.xlu0 %v5535_v53 }
 0x63a   : > { %v5540_v61 = vpop.eup %4511  ;;  %4519 = vpow2.f32 %v2660_v11  ;;  %v2658_v16 = vmul.f32 1.442695, %v2629_v60  ;;  %v2094_v11 = vld [vmem:[#allocation3 + $0x48] sm:$0xff] }
 0x63b   : > { %2682 = vadd.xlane.f32.xlu1 %v5540_v61 }
 0x63c   : > { %v5543_v55 = vpop.eup %4513  ;;  %4521 = vpow2.f32 %v2658_v16  ;;  %v2096_v16 = vld [vmem:[#allocation3 + $0x58] sm:$0xff] }
 0x63d   : > { %2684 = vadd.xlane.f32.xlu0 %v5543_v55  ;;  %4523 = vpow2.f32 %v2662_v10 }
 0x63e   : > { %v5546_v18 = vpop.eup %4515 }
 0x63f   : > { %2686 = vadd.xlane.f32.xlu1 %v5546_v18 }
 0x640   : > { %v5549_v14 = vpop.eup %4517 }
 0x641   : > { %2688 = vadd.xlane.f32.xlu0 %v5549_v14 }
 0x644   : > { %v5552_v15 = vpop.eup %4519 }
 0x645   : > { %2692 = vadd.xlane.f32.xlu0 %v5552_v15 }
 0x646   : > { %v5555_v19 = vpop.eup %4521 }
 0x647   : > { %2690 = vadd.xlane.f32.xlu1 %v5555_v19  ;;  %v5558_v20 = vpop.eup %4523 }
 0x64b   : > { %2694 = vadd.xlane.f32.xlu1 %v5558_v20 }
 0x67e   : > { %v2311_v21 = vpop.xlane.xlu0 %2310 }
 0x67f   : > { %4525 = vrcp.f32 %v2311_v21  ;;  %v2098_v21 = vld [vmem:[#allocation3 + $0x68] sm:$0xff] }
 0x682   : > { %v2315_v22 = vpop.xlane.xlu0 %2314  ;;  %v2313_v59 = vpop.xlane.xlu1 %2312 }
 0x683   : > { %4527 = vrcp.f32 %v2313_v59 }
 0x684   : > { %4529 = vrcp.f32 %v2315_v22 }
 0x686   : > { %v2317_v5 = vpop.xlane.xlu1 %2316 }
 0x687   : > { %4531 = vrcp.f32 %v2317_v5  ;;  %v2100_v5 = vld [vmem:[#allocation3 + $0x78] sm:$0xff] }
 0x689   : > { %v4526_v63 = vpop.eup %4525 }
 0x68a   : > { %v2358_v58 = vmul.f32 %v4526_v63, %v5434_v31 }
 0x68d   : > { %v4528_v24 = vpop.eup %4527 }
 0x68e   : > { %v2319_v0 = vpop.xlane.xlu0 %2318  ;;  %v4530_v4 = vpop.eup %4529  ;;  %v2359_v28 = vmul.f32 %v4528_v24, %v5440_v36  ;;  %v2090_v36 = vld [vmem:[#allocation3 + $0x28] sm:$0xff] }
 0x68f   : > { %4533 = vrcp.f32 %v2319_v0  ;;  %v2360_v9 = vmul.f32 %v4530_v4, %v5438_v34 }
 0x690   : > { %v2321_v32 = vpop.xlane.xlu1 %2320  ;;  %v2374_v37 = vpack.c.bf16 %v2359_v28, %v2358_v58 }
 0x691   : > { %v4532_v33 = vpop.eup %4531  ;;  %4535 = vrcp.f32 %v2321_v32 }
 0x692   : > { %v2361_v38 = vmul.f32 %v4532_v33, %v5446_v43  ;;  %v2323_v39 = vpop.xlane.xlu0 %2322  ;;  %3879 = vmatprep.mubr.bf16.mxu1 %v2374_v37 }
 0x693   : > { %4537 = vrcp.f32 %v2323_v39 }
 0x694   : > { %v2325_v40 = vpop.xlane.xlu1 %2324  ;;  %v2375_v41 = vpack.c.bf16 %v2361_v38, %v2360_v9 }
 0x695   : > { %4539 = vrcp.f32 %v2325_v40 }
 0x696   : > { %3880 = vmatmul.mubr.bf16.vlgmr.msra.gmra.mrb[48].mxu1 %v2375_v41 }
 0x697   : > { %3928 = vmatpush3.bf16.msra.mxu1 %v5497_v54 }
 0x698   : > { %3929 = vmatprep.subr.bf16.mxu1 %v2088_v7 }
 0x699   : > { %v4534_v31 = vpop.eup %4533 }
 0x69a   : > { %v2362_v44 = vmul.f32 %v4534_v31, %v5450_v48 }
 0x69b   : > { %v4536_v42 = vpop.eup %4535  ;;  %3930 = vmatpush3.bf16.msra.mxu1 %v2088_v7 }
 0x69c   : > { %v2363_v34 = vmul.f32 %v4536_v42, %v5453_v52  ;;  %3931 = vmatprep.subr.bf16.mxu1 %v2090_v36 }
 0x69d   : > { %v4538_v43 = vpop.eup %4537 }
 0x69e   : > { %v2327_v46 = vpop.xlane.xlu0 %2326  ;;  %v2376_v47 = vpack.c.bf16 %v2363_v34, %v2362_v44  ;;  %v2364_v54 = vmul.f32 %v4538_v43, %v5457_v57 }
 0x69f   : > { %v4540_v8 = vpop.eup %4539  ;;  %4541 = vrcp.f32 %v2327_v46  ;;  %3932 = vmatpush3.bf16.msra.mxu1 %v2090_v36 }
 0x6a0   : > { %3883 = vmatprep.mubr.bf16.mxu1 %v2376_v47  ;;  %v2329_v50 = vpop.xlane.xlu1 %2328  ;;  %v2365_v12 = vmul.f32 %v4540_v8, %v5461_v17  ;;  %3933 = vmatprep.subr.bf16.mxu1 %v2092_v45 }
 0x6a1   : > { %4543 = vrcp.f32 %v2329_v50 }
 0x6a2   : > { %v2331_v48 = vpop.xlane.xlu0 %2330  ;;  %v2377_v60 = vpack.c.bf16 %v2365_v12, %v2364_v54 }
 0x6a3   : > { %4545 = vrcp.f32 %v2331_v48  ;;  %3934 = vmatpush3.bf16.msra.mxu1 %v2092_v45 }
 0x6a4   : > { %3884 = vmatmul.mubr.bf16.gmra.mrb[52].mxu1 %v2377_v60  ;;  %v2333_v52 = vpop.xlane.xlu1 %2332  ;;  %3935 = vmatprep.subr.bf16.mxu1 %v2094_v11 }
 0x6a5   : > { %4547 = vrcp.f32 %v2333_v52 }
 0x6a7   : > { %3936 = vmatpush3.bf16.msra.mxu1 %v2094_v11 }
 0x6a8   : > { %3937 = vmatprep.subr.bf16.mxu1 %v2096_v16 }
 0x6a9   : > { %v4542_v10 = vpop.eup %4541 }
 0x6aa   : > { %v2366_v57 = vmul.f32 %v4542_v10, %v5466_v25 }
 0x6ab   : > { %v4544_v22 = vpop.eup %4543  ;;  %3938 = vmatpush3.bf16.msra.mxu1 %v2096_v16 }
 0x6ac   : > { %v2367_v17 = vmul.f32 %v4544_v22, %v5469_v26  ;;  %3939 = vmatprep.subr.bf16.mxu1 %v2098_v21 }
 0x6ad   : > { %v4546_v59 = vpop.eup %4545 }
 0x6ae   : > { %v2335_v63 = vpop.xlane.xlu0 %2334  ;;  %v2378_v24 = vpack.c.bf16 %v2367_v17, %v2366_v57  ;;  %v2368_v58 = vmul.f32 %v4546_v59, %v5473_v29 }
 0x6af   : > { %v4548_v0 = vpop.eup %4547  ;;  %4549 = vrcp.f32 %v2335_v63  ;;  %3940 = vmatpush3.bf16.msra.mxu1 %v2098_v21 }
 0x6b0   : > { %3887 = vmatprep.mubr.bf16.mxu1 %v2378_v24  ;;  %v2337_v4 = vpop.xlane.xlu1 %2336  ;;  %v2369_v28 = vmul.f32 %v4548_v0, %v5477_v35  ;;  %3941 = vmatprep.subr.bf16.mxu1 %v2100_v5 }
 0x6b1   : > { %4551 = vrcp.f32 %v2337_v4 }
 0x6b2   : > { %v2339_v32 = vpop.xlane.xlu0 %2338  ;;  %v2379_v25 = vpack.c.bf16 %v2369_v28, %v2368_v58 }
 0x6b3   : > { %4553 = vrcp.f32 %v2339_v32  ;;  %3942 = vmatpush3.bf16.msra.mxu1 %v2100_v5 }
 0x6b4   : > { %3888 = vmatmul.mubr.bf16.gmra.mrb[56].mxu1 %v2379_v25  ;;  %v2341_v26 = vpop.xlane.xlu1 %2340 }
 0x6b5   : > { %4555 = vrcp.f32 %v2341_v26 }
 0x6b6   : > { %v2665_v33 = vpop.xlane.xlu0 %2664 }
 0x6b7   : > { %4557 = vrcp.f32 %v2665_v33 }
 0x6b8   : > { %v2667_v37 = vpop.xlane.xlu1 %2666 }
 0x6b9   : > { %v4550_v9 = vpop.eup %4549  ;;  %4559 = vrcp.f32 %v2667_v37 }
 0x6ba   : > { %v2669_v38 = vpop.xlane.xlu0 %2668  ;;  %v2370_v35 = vmul.f32 %v4550_v9, %v5485_v56 }
 0x6bb   : > { %v4552_v39 = vpop.eup %4551  ;;  %4561 = vrcp.f32 %v2669_v38 }
 0x6bc   : > { %v2671_v29 = vpop.xlane.xlu1 %2670  ;;  %v2371_v40 = vmul.f32 %v4552_v39, %v5489_v51 }
 0x6bd   : > { %v4554_v41 = vpop.eup %4553  ;;  %4563 = vrcp.f32 %v2671_v29 }
 0x6be   : > { %v2673_v7 = vpop.xlane.xlu0 %2672  ;;  %v2380_v31 = vpack.c.bf16 %v2371_v40, %v2370_v35  ;;  %v2372_v44 = vmul.f32 %v4554_v41, %v5493_v49  ;;  %v4415_v40 = vld [vmem:[#allocation13 + $0x84] ss:$8 sps:$4 sm:$0xff]   ;;  %v4416_v41 = vld [vmem:[#allocation13 + $0x90] ss:$8 sps:$4 sm:$0xff]  }
 0x6bf   : > { %v4556_v36 = vpop.eup %4555  ;;  %4565 = vrcp.f32 %v2673_v7  ;;  %2921 = vmatprep.subr.bf16.mxu0 %v4415_v40  ;;  %v4418_v7 = vld [vmem:[#allocation13 + $0x94] ss:$8 sps:$4 sm:$0xff]  }
 0x6c0   : > { %3891 = vmatprep.mubr.bf16.mxu1 %v2380_v31  ;;  %v2675_v42 = vpop.xlane.xlu1 %2674  ;;  %v2373_v34 = vmul.f32 %v4556_v36, %v5499_v1  ;;  %v4424_v31 = vld [vmem:[#allocation13 + $0xb4] ss:$8 sps:$4 sm:$0xff]   ;;  %v4422_v36 = vld [vmem:[#allocation13 + $0xb0] ss:$8 sps:$4 sm:$0xff]  }
 0x6c1   : > { %v4558_v43 = vpop.eup %4557  ;;  %4567 = vrcp.f32 %v2675_v42  ;;  %v4428_v42 = vld [vmem:[#allocation13 + $0xd0] ss:$8 sps:$4 sm:$0xff]  }
 0x6c2   : > { %v2677_v45 = vpop.xlane.xlu0 %2676  ;;  %v2381_v46 = vpack.c.bf16 %v2373_v34, %v2372_v44  ;;  %v2712_v51 = vmul.f32 %v4558_v43, %v5504_v23  ;;  %v4430_v44 = vld [vmem:[#allocation13 + $0xd4] ss:$8 sps:$4 sm:$0xff]   ;;  %v4431_v34 = vld [vmem:[#allocation13 + $0xe0] ss:$8 sps:$4 sm:$0xff]   ;;  %v4433_v43 = vld [vmem:[#allocation13 + $0xe4] ss:$8 sps:$4 sm:$0xff]  }
 0x6c3   : > { %v4560_v47 = vpop.eup %4559  ;;  %4569 = vrcp.f32 %v2677_v45  ;;  %v4434_v45 = vld [vmem:[#allocation13 + $0xf0] ss:$8 sps:$4 sm:$0xff]  }
 0x6c4   : > { %3892 = vmatmul.mubr.bf16.gmra.mrb[60].mxu1 %v2381_v46  ;;  %v2679_v56 = vpop.xlane.xlu1 %2678  ;;  %v2713_v8 = vmul.f32 %v4560_v47, %v5508_v27  ;;  %v4436_v46 = vld [vmem:[#allocation13 + $0xf4] ss:$8 sps:$4 sm:$0xff]   ;;  %v4439_v47 = vld [vmem:[#allocation13 + $0x4] ss:$8 sps:$4 sm:$0xff]  }
 0x6c5   : > { %v4562_v50 = vpop.eup %4561  ;;  %4571 = vrcp.f32 %v2679_v56  ;;  %v4903_v56 = vmov 0  }
 0x6c6   : > { %v2681_v54 = vpop.xlane.xlu0 %2680  ;;  %v2728_v12 = vpack.c.bf16 %v2713_v8, %v2712_v51  ;;  %v2714_v49 = vmul.f32 %v4562_v50, %v5512_v30  ;;  %2953 = vmatprep.mubr.bf16.mxu0 %v4903_v56 }
 0x6c7   : > { %v4564_v11 = vpop.eup %4563  ;;  %4573 = vrcp.f32 %v2681_v54 }
 0x6c8   : > { %v2715_v1 = vmul.f32 %v4564_v11, %v5516_v62  ;;  %3943 = vmatprep.mubr.bf16.mxu1 %v2728_v12  ;;  %v2683_v48 = vpop.xlane.xlu1 %2682 }
 0x6c9   : > { %v4566_v60 = vpop.eup %4565  ;;  %4575 = vrcp.f32 %v2683_v48 }
 0x6ca   : > { %v2685_v52 = vpop.xlane.xlu0 %2684  ;;  %v2729_v16 = vpack.c.bf16 %v2715_v1, %v2714_v49  ;;  %v2716_v27 = vmul.f32 %v4566_v60, %v5520_v3 }
 0x6cb   : > { %v4568_v10 = vpop.eup %4567  ;;  %4577 = vrcp.f32 %v2685_v52 }
 0x6cc   : > { %3944 = vmatmul.mubr.bf16.vlgmr.msra.gmra.mrb[64].mxu1 %v2729_v16  ;;  %v2687_v23 = vpop.xlane.xlu1 %2686  ;;  %v2717_v21 = vmul.f32 %v4568_v10, %v5524_v13 }
 0x6cd   : > { %v4570_v22 = vpop.eup %4569  ;;  %4579 = vrcp.f32 %v2687_v23 }
 0x6ce   : > { %v2689_v57 = vpop.xlane.xlu0 %2688  ;;  %v2730_v30 = vpack.c.bf16 %v2717_v21, %v2716_v27  ;;  %v2718_v62 = vmul.f32 %v4570_v22, %v5528_v2 }
 0x6cf   : > { %v4572_v17 = vpop.eup %4571  ;;  %4581 = vrcp.f32 %v2689_v57 }
 0x6d0   : > { %3947 = vmatprep.mubr.bf16.mxu1 %v2730_v30  ;;  %v2719_v59 = vmul.f32 %v4572_v17, %v5531_v6 }
 0x6d1   : > { %v4574_v5 = vpop.eup %4573 }
 0x6d2   : > { %v2731_v63 = vpack.c.bf16 %v2719_v59, %v2718_v62  ;;  %v2693_v0 = vpop.xlane.xlu0 %2692  ;;  %v2720_v3 = vmul.f32 %v4574_v5, %v5535_v53 }
 0x6d3   : > { %v4576_v24 = vpop.eup %4575 }
 0x6d4   : > { %3948 = vmatmul.mubr.bf16.gmra.mrb[68].mxu1 %v2731_v63  ;;  %v2691_v4 = vpop.xlane.xlu1 %2690  ;;  %v2721_v13 = vmul.f32 %v4576_v24, %v5540_v61 }
 0x6d5   : > { %v4578_v58 = vpop.eup %4577  ;;  %4583 = vrcp.f32 %v2691_v4 }
 0x6d6   : > { %v2732_v28 = vpack.c.bf16 %v2721_v13, %v2720_v3  ;;  %4585 = vrcp.f32 %v2693_v0  ;;  %v2722_v6 = vmul.f32 %v4578_v58, %v5543_v55  ;;  %v4437_v58 = vld [vmem:[#allocation13] ss:$8 sps:$4 sm:$0xff]  }
 0x6d7   : > { %v4580_v32 = vpop.eup %4579 }
 0x6d8   : > { %3951 = vmatprep.mubr.bf16.mxu1 %v2732_v28  ;;  %v2695_v2 = vpop.xlane.xlu1 %2694  ;;  %v2723_v25 = vmul.f32 %v4580_v32, %v5546_v18  ;;  %v4413_v18 = vld [vmem:[#allocation13 + $0x80] ss:$8 sps:$4 sm:$0xff]   ;;  %v4442_v32 = vld [vmem:[#allocation13 + $0x14] ss:$8 sps:$4 sm:$0xff]  }
 0x6d9   : > { %4587 = vrcp.f32 %v2695_v2  ;;  %v4582_v33 = vpop.eup %4581  ;;  %2922 = vmatpush1.bf16.msra.mxu0 %v4413_v18  ;;  %v4440_v2 = vld [vmem:[#allocation13 + $0x10] ss:$8 sps:$4 sm:$0xff]  }
 0x6da   : > { %v2733_v26 = vpack.c.bf16 %v2723_v25, %v2722_v6  ;;  %v2724_v53 = vmul.f32 %v4582_v33, %v5549_v14  ;;  %2923 = vmatprep.subr.bf16.mxu0 %v4418_v7  ;;  %v4419_v14 = vld [vmem:[#allocation13 + $0xa0] ss:$8 sps:$4 sm:$0xff]   ;;  %v4445_v25 = vld [vmem:[#allocation13 + $0x24] ss:$8 sps:$4 sm:$0xff]  }
 0x6db   : > { %v4449_v7 = vld [vmem:[#allocation13 + $0x40] ss:$8 sps:$4 sm:$0xff]  }
 0x6dc   : > { %3952 = vmatmul.mubr.bf16.gmra.mrb[72].mxu1 %v2733_v26 }
 0x6dd   : > { %2924 = vmatpush1.bf16.msra.mxu0 %v4416_v41 }
 0x6df   : > { %v4584_v37 = vpop.eup %4583 }
 0x6e0   : > { %v2725_v61 = vmul.f32 %v4584_v37, %v5555_v19  ;;  %v4586_v9 = vpop.eup %4585  ;;  %v4421_v19 = vld [vmem:[#allocation13 + $0xa4] ss:$8 sps:$4 sm:$0xff]  }
 0x6e1   : > { %v2726_v29 = vmul.f32 %v4586_v9, %v5552_v15  ;;  %2925 = vmatprep.subr.bf16.mxu0 %v4421_v19  ;;  %v4427_v15 = vld [vmem:[#allocation13 + $0xc4] ss:$8 sps:$4 sm:$0xff]   ;;  %v4454_v19 = vld [vmem:[#allocation13 + $0x54] ss:$8 sps:$4 sm:$0xff]  }
 0x6e2   : > { %v2734_v38 = vpack.c.bf16 %v2725_v61, %v2724_v53  ;;  %2926 = vmatpush1.bf16.msra.mxu0 %v4419_v14  ;;  %v4443_v61 = vld [vmem:[#allocation13 + $0x20] ss:$8 sps:$4 sm:$0xff]  }
 0x6e3   : > { %v4588_v39 = vpop.eup %4587  ;;  %2927 = vmatprep.subr.bf16.mxu0 %v4424_v31  ;;  %v4452_v31 = vld [vmem:[#allocation13 + $0x50] ss:$8 sps:$4 sm:$0xff]  }
 0x6e4   : > { %3955 = vmatprep.mubr.bf16.mxu1 %v2734_v38  ;;  %v2727_v35 = vmul.f32 %v4588_v39, %v5558_v20  ;;  %v4425_v20 = vld [vmem:[#allocation13 + $0xc0] ss:$8 sps:$4 sm:$0xff]   ;;  %v4448_v38 = vld [vmem:[#allocation13 + $0x34] ss:$8 sps:$4 sm:$0xff]   ;;  %v4446_v39 = vld [vmem:[#allocation13 + $0x30] ss:$8 sps:$4 sm:$0xff]  }
 0x6e6   : > { %v2735_v55 = vpack.c.bf16 %v2727_v35, %v2726_v29  ;;  %2928 = vmatpush1.bf16.msra.mxu0 %v4422_v36  ;;  %v4451_v35 = vld [vmem:[#allocation13 + $0x44] ss:$8 sps:$4 sm:$0xff]  }
 0x6e7   : > { %2929 = vmatprep.subr.bf16.mxu0 %v4427_v15  ;;  %v4457_v36 = vld [vmem:[#allocation13 + $0x64] ss:$8 sps:$4 sm:$0xff]   ;;  %v4455_v15 = vld [vmem:[#allocation13 + $0x60] ss:$8 sps:$4 sm:$0xff]  }
 0x6e8   : > { %3956 = vmatmul.mubr.bf16.gmra.mrb[76].mxu1 %v2735_v55 }
 0x6ea   : > { %2930 = vmatpush1.bf16.msra.mxu0 %v4425_v20 }
 0x6eb   : > { %2931 = vmatprep.subr.bf16.mxu0 %v4430_v44 }
 0x6ee   : > { %2932 = vmatpush1.bf16.msra.mxu0 %v4428_v42  ;;  %v4460_v42 = vld [vmem:[#allocation13 + $0x74] ss:$8 sps:$4 sm:$0xff]  }
 0x6ef   : > { %2933 = vmatprep.subr.bf16.mxu0 %v4433_v43 }
 0x6f2   : > { %2934 = vmatpush1.bf16.msra.mxu0 %v4431_v34 }
 0x6f3   : > { %2935 = vmatprep.subr.bf16.mxu0 %v4436_v46  ;;  %v4458_v46 = vld [vmem:[#allocation13 + $0x70] ss:$8 sps:$4 sm:$0xff]  }
 0x6f6   : > { %2936 = vmatpush1.bf16.msra.mxu0 %v4434_v45 }
 0x6f7   : > { %3114 = vmatprep.subr.bf16.mxu0 %v4439_v47 }
 0x769   : > { %v5595_v51 = vpop.f32.mrb[48].mxu1 }
 0x76a   : > { %v5597_v8 = vpop.f32.mrb[49].mxu1 }
 0x76b   : > { %v5599_v50 = vpop.f32.mrb[50].mxu1 }
 0x76c   : > { %v2480_v54 = vpack.c.bf16 %v5599_v50, %v5595_v51  ;;  %v5603_v12 = vpop.f32.mrb[51].mxu1 }
 0x76d   : > { %v2479_v11 = vpack.c.bf16 %v5603_v12, %v5597_v8 }
 0x777   : > { %v5607_v49 = vpop.f32.mrb[52].mxu1 }
 0x778   : > { %v5609_v1 = vpop.f32.mrb[53].mxu1 }
 0x779   : > { %v5611_v48 = vpop.f32.mrb[54].mxu1 }
 0x77a   : > { %v2482_v60 = vpack.c.bf16 %v5611_v48, %v5607_v49  ;;  %v5615_v52 = vpop.f32.mrb[55].mxu1 }
 0x77b   : > { %v2481_v16 = vpack.c.bf16 %v5615_v52, %v5609_v1 }
 0x787   : > { %v5619_v10 = vpop.f32.mrb[56].mxu1 }
 0x788   : > { %v5621_v23 = vpop.f32.mrb[57].mxu1 }
 0x789   : > { %v5623_v27 = vpop.f32.mrb[58].mxu1 }
 0x78a   : > { %v2484_v21 = vpack.c.bf16 %v5623_v27, %v5619_v10  ;;  %v5627_v22 = vpop.f32.mrb[59].mxu1 }
 0x78b   : > { %v2483_v57 = vpack.c.bf16 %v5627_v22, %v5621_v23 }
 0x797   : > { %v5631_v30 = vpop.f32.mrb[60].mxu1 }
 0x798   : > { %v5633_v17 = vpop.f32.mrb[61].mxu1 }
 0x799   : > { %v5635_v62 = vpop.f32.mrb[62].mxu1 }
 0x79a   : > { %v2486_v59 = vpack.c.bf16 %v5635_v62, %v5631_v30  ;;  %v5639_v5 = vpop.f32.mrb[63].mxu1 }
 0x79b   : > { %v2485_v63 = vpack.c.bf16 %v5639_v5, %v5633_v17 }
 0x79f   : > { %v3945_v24 = vpop.f32.mrb[64].mxu1 }
 0x7a0   : > { %v2770_v0 = vpop.f32.mrb[65].mxu1 }
 0x7a1   : > { %v3946_v4 = vpop.f32.mrb[66].mxu1 }
 0x7a2   : > { %v2834_v3 = vpack.c.bf16 %v3946_v4, %v3945_v24  ;;  %v2773_v13 = vpop.f32.mrb[67].mxu1 }
 0x7a3   : > { %v2833_v28 = vpack.c.bf16 %v2773_v13, %v2770_v0 }
 0x7a5   : > { %2954 = vmatmul.mubr.bf16.vlgmr.msra.gmra.mrb[16].mxu0 %v2833_v28 }
 0x7a6   : > { %3115 = vmatpush1.bf16.msra.mxu0 %v4437_v58  ;;  %2963 = vmatprep.mubr.bf16.mxu0 %v4903_v56 }
 0x7a7   : > { %v3949_v6 = vpop.f32.mrb[68].mxu1  ;;  %3116 = vmatprep.subr.bf16.mxu0 %v4442_v32 }
 0x7a8   : > { %v2786_v26 = vpop.f32.mrb[69].mxu1 }
 0x7a9   : > { %v3950_v33 = vpop.f32.mrb[70].mxu1 }
 0x7aa   : > { %v2836_v37 = vpack.c.bf16 %v3950_v33, %v3949_v6  ;;  %v2789_v53 = vpop.f32.mrb[71].mxu1  ;;  %3117 = vmatpush1.bf16.msra.mxu0 %v4440_v2 }
 0x7ab   : > { %v2835_v9 = vpack.c.bf16 %v2789_v53, %v2786_v26  ;;  %3118 = vmatprep.subr.bf16.mxu0 %v4445_v25 }
 0x7ad   : > { %2964 = vmatmul.mubr.bf16.gmra.mrb[20].mxu0 %v2834_v3 }
 0x7ae   : > { %2973 = vmatprep.mubr.bf16.mxu0 %v4903_v56  ;;  %3119 = vmatpush1.bf16.msra.mxu0 %v4443_v61 }
 0x7af   : > { %v3953_v29 = vpop.f32.mrb[72].mxu1  ;;  %3120 = vmatprep.subr.bf16.mxu0 %v4448_v38 }
 0x7b0   : > { %v2802_v55 = vpop.f32.mrb[73].mxu1 }
 0x7b1   : > { %v3954_v18 = vpop.f32.mrb[74].mxu1 }
 0x7b2   : > { %v2838_v40 = vpack.c.bf16 %v3954_v18, %v3953_v29  ;;  %v2805_v41 = vpop.f32.mrb[75].mxu1  ;;  %3121 = vmatpush1.bf16.msra.mxu0 %v4446_v39 }
 0x7b3   : > { %v2837_v14 = vpack.c.bf16 %v2805_v41, %v2802_v55  ;;  %3122 = vmatprep.subr.bf16.mxu0 %v4451_v35 }
 0x7b5   : > { %2974 = vmatmul.mubr.bf16.gmra.mrb[24].mxu0 %v2835_v9 }
 0x7b6   : > { %2983 = vmatprep.mubr.bf16.mxu0 %v4903_v56  ;;  %3123 = vmatpush1.bf16.msra.mxu0 %v4449_v7 }
 0x7b7   : > { %3124 = vmatprep.subr.bf16.mxu0 %v4454_v19 }
 0x7ba   : > { %3125 = vmatpush1.bf16.msra.mxu0 %v4452_v31 }
 0x7bb   : > { %v3957_v20 = vpop.f32.mrb[76].mxu1  ;;  %3126 = vmatprep.subr.bf16.mxu0 %v4457_v36 }
 0x7bc   : > { %v2818_v44 = vpop.f32.mrb[77].mxu1 }
 0x7bd   : > { %v3958_v34 = vpop.f32.mrb[78].mxu1  ;;  %2984 = vmatmul.mubr.bf16.gmra.mrb[28].mxu0 %v2836_v37 }
 0x7be   : > { %v2840_v43 = vpack.c.bf16 %v3958_v34, %v3957_v20  ;;  %v2821_v45 = vpop.f32.mrb[79].mxu1  ;;  %2993 = vmatprep.mubr.bf16.mxu0 %v4903_v56  ;;  %3127 = vmatpush1.bf16.msra.mxu0 %v4455_v15 }
 0x7bf   : > { %v2839_v47 = vpack.c.bf16 %v2821_v45, %v2818_v44  ;;  %3128 = vmatprep.subr.bf16.mxu0 %v4460_v42 }
 0x7c2   : > { %3129 = vmatpush1.bf16.msra.mxu0 %v4458_v46 }
 0x7c5   : > { %2994 = vmatmul.mubr.bf16.gmra.mrb[32].mxu0 %v2837_v14 }
 0x7c6   : > { %3003 = vmatprep.mubr.bf16.mxu0 %v4903_v56 }
 0x7cd   : > { %3004 = vmatmul.mubr.bf16.gmra.mrb[36].mxu0 %v2838_v40 }
 0x7ce   : > { %3013 = vmatprep.mubr.bf16.mxu0 %v4903_v56 }
 0x7d5   : > { %3014 = vmatmul.mubr.bf16.gmra.mrb[40].mxu0 %v2839_v47 }
 0x7d6   : > { %3023 = vmatprep.mubr.bf16.mxu0 %v4903_v56 }
 0x7dd   : > { %3024 = vmatmul.mubr.bf16.gmra.mrb[44].mxu0 %v2840_v43 }
 0x7de   : > { %3146 = vmatprep.mubr.bf16.mxu0 %v4903_v56 }
 0x7e5   : > { %3147 = vmatmul.mubr.bf16.vlgmr.msra.gmra.mrb[16].mxu0 %v2479_v11 }
 0x7e6   : > { %3156 = vmatprep.mubr.bf16.mxu0 %v4903_v56 }
 0x7ed   : > { %3157 = vmatmul.mubr.bf16.gmra.mrb[20].mxu0 %v2480_v54 }
 0x7ee   : > { %3166 = vmatprep.mubr.bf16.mxu0 %v4903_v56 }
 0x7f5   : > { %3167 = vmatmul.mubr.bf16.gmra.mrb[24].mxu0 %v2481_v16 }
 0x7f6   : > { %3176 = vmatprep.mubr.bf16.mxu0 %v4903_v56 }
 0x7fd   : > { %3177 = vmatmul.mubr.bf16.gmra.mrb[28].mxu0 %v2482_v60 }
 0x7fe   : > { %3186 = vmatprep.mubr.bf16.mxu0 %v4903_v56 }
 0x805   : > { %3187 = vmatmul.mubr.bf16.gmra.mrb[32].mxu0 %v2483_v57 }
 0x806   : > { %3196 = vmatprep.mubr.bf16.mxu0 %v4903_v56 }
 0x80d   : > { %3197 = vmatmul.mubr.bf16.gmra.mrb[36].mxu0 %v2484_v21 }
 0x80e   : > { %3206 = vmatprep.mubr.bf16.mxu0 %v4903_v56 }
 0x815   : > { %3207 = vmatmul.mubr.bf16.gmra.mrb[40].mxu0 %v2485_v63 }
 0x816   : > { %3216 = vmatprep.mubr.bf16.mxu0 %v4903_v56 }
 0x81d   : > { %3217 = vmatmul.mubr.bf16.gmra.mrb[44].mxu0 %v2486_v59 }
 0x8b8   : > { %v3148_v51 = vpop.f32.mrb[16].mxu0 }
 0x8b9   : > { %v3150_v8 = vpop.f32.mrb[17].mxu0 }
 0x8ba   : > { %v3750_v50 = vpack.c.bf16 %v3150_v8, %v3148_v51  ;;  %v3152_v54 = vpop.f32.mrb[18].mxu0 }
 0x8bb   : > { %v3154_v12 = vpop.f32.mrb[19].mxu0 }
 0x8bc   : > { %3323 = vst [vmem:[%s5279_s13] sm:$0xff] %v3750_v50  ;;  %v3751_v11 = vpack.c.bf16 %v3154_v12, %v3152_v54 }
 0x8be   : > { %3324 = vst [vmem:[%s5279_s13 + $0x8] sm:$0xff] %v3751_v11 }
 0x8c0   : > { %v3158_v49 = vpop.f32.mrb[20].mxu0 }
 0x8c1   : > { %v3160_v1 = vpop.f32.mrb[21].mxu0 }
 0x8c2   : > { %v3752_v48 = vpack.c.bf16 %v3160_v1, %v3158_v49  ;;  %v3162_v60 = vpop.f32.mrb[22].mxu0 }
 0x8c3   : > { %v3164_v56 = vpop.f32.mrb[23].mxu0 }
 0x8c4   : > { %3325 = vst [vmem:[%s5279_s13 + $0x10] sm:$0xff] %v3752_v48  ;;  %v3753_v52 = vpack.c.bf16 %v3164_v56, %v3162_v60 }
 0x8c6   : > { %3326 = vst [vmem:[%s5279_s13 + $0x18] sm:$0xff] %v3753_v52 }
 0x8c8   : > { %v3168_v16 = vpop.f32.mrb[24].mxu0 }
 0x8c9   : > { %v3170_v10 = vpop.f32.mrb[25].mxu0 }
 0x8ca   : > { %v3754_v23 = vpack.c.bf16 %v3170_v10, %v3168_v16  ;;  %v3172_v27 = vpop.f32.mrb[26].mxu0 }
 0x8cb   : > { %v3174_v21 = vpop.f32.mrb[27].mxu0 }
 0x8cc   : > { %3327 = vst [vmem:[%s5279_s13 + $0x20] sm:$0xff] %v3754_v23  ;;  %v3755_v22 = vpack.c.bf16 %v3174_v21, %v3172_v27 }
 0x8ce   : > { %3328 = vst [vmem:[%s5279_s13 + $0x28] sm:$0xff] %v3755_v22 }
 0x8d0   : > { %v3178_v57 = vpop.f32.mrb[28].mxu0 }
 0x8d1   : > { %v3180_v30 = vpop.f32.mrb[29].mxu0 }
 0x8d2   : > { %v3756_v17 = vpack.c.bf16 %v3180_v30, %v3178_v57  ;;  %v3182_v62 = vpop.f32.mrb[30].mxu0 }
 0x8d3   : > { %v3184_v59 = vpop.f32.mrb[31].mxu0 }
 0x8d4   : > { %3329 = vst [vmem:[%s5279_s13 + $0x30] sm:$0xff] %v3756_v17  ;;  %v3757_v5 = vpack.c.bf16 %v3184_v59, %v3182_v62 }
 0x8d6   : > { %3330 = vst [vmem:[%s5279_s13 + $0x38] sm:$0xff] %v3757_v5 }
 0x8d8   : > { %v3188_v63 = vpop.f32.mrb[32].mxu0 }
 0x8d9   : > { %v3190_v24 = vpop.f32.mrb[33].mxu0 }
 0x8da   : > { %v3758_v0 = vpack.c.bf16 %v3190_v24, %v3188_v63  ;;  %v3192_v4 = vpop.f32.mrb[34].mxu0 }
 0x8db   : > { %v3194_v3 = vpop.f32.mrb[35].mxu0 }
 0x8dc   : > { %3331 = vst [vmem:[%s5279_s13 + $0x40] sm:$0xff] %v3758_v0  ;;  %v3759_v13 = vpack.c.bf16 %v3194_v3, %v3192_v4 }
 0x8de   : > { %3332 = vst [vmem:[%s5279_s13 + $0x48] sm:$0xff] %v3759_v13 }
 0x8e0   : > { %v3198_v58 = vpop.f32.mrb[36].mxu0 }
 0x8e1   : > { %v3200_v28 = vpop.f32.mrb[37].mxu0 }
 0x8e2   : > { %v3760_v32 = vpack.c.bf16 %v3200_v28, %v3198_v58  ;;  %v3202_v2 = vpop.f32.mrb[38].mxu0 }
 0x8e3   : > { %v3204_v6 = vpop.f32.mrb[39].mxu0 }
 0x8e4   : > { %3333 = vst [vmem:[%s5279_s13 + $0x50] sm:$0xff] %v3760_v32  ;;  %v3761_v25 = vpack.c.bf16 %v3204_v6, %v3202_v2 }
 0x8e6   : > { %3334 = vst [vmem:[%s5279_s13 + $0x58] sm:$0xff] %v3761_v25 }
 0x8e8   : > { %v3208_v26 = vpop.f32.mrb[40].mxu0 }
 0x8e9   : > { %v3210_v33 = vpop.f32.mrb[41].mxu0 }
 0x8ea   : > { %v3762_v37 = vpack.c.bf16 %v3210_v33, %v3208_v26  ;;  %v3212_v53 = vpop.f32.mrb[42].mxu0 }
 0x8eb   : > { %v3214_v61 = vpop.f32.mrb[43].mxu0 }
 0x8ec   : > { %3335 = vst [vmem:[%s5279_s13 + $0x60] sm:$0xff] %v3762_v37  ;;  %v3763_v9 = vpack.c.bf16 %v3214_v61, %v3212_v53 }
 0x8ee   : > { %3336 = vst [vmem:[%s5279_s13 + $0x68] sm:$0xff] %v3763_v9 }
 0x8f0   : > { %v3218_v38 = vpop.f32.mrb[44].mxu0 }
 0x8f1   : > { %v3220_v39 = vpop.f32.mrb[45].mxu0 }
 0x8f2   : > { %v3764_v29 = vpack.c.bf16 %v3220_v39, %v3218_v38  ;;  %v3222_v35 = vpop.f32.mrb[46].mxu0 }
 0x8f3   : > { %v3224_v55 = vpop.f32.mrb[47].mxu0 }
 0x8f4   : > { %3337 = vst [vmem:[%s5279_s13 + $0x70] sm:$0xff] %v3764_v29  ;;  %v3765_v18 = vpack.c.bf16 %v3224_v55, %v3222_v35 }
 0x8f6   : > { %3338 = vst [vmem:[%s5279_s13 + $0x78] sm:$0xff] %v3765_v18 }
 0x8f7   : > { %4772 = shalt.err (!%p4769_p7)
}
 0x8f8   : > { %s4773_s2 = scalar_lea.hbm %s5702_s28, 2048  ;;  %s4777_s19 = scalar_lea.hbm %s5825_s6, 8192 }
 0x8f9   : > { %p4774_p0 = scmp.ne.s32.totalorder %s5702_s28, %s4773_s2  ;;  %p4778_p3 = scmp.lt.u32.totalorder %s5702_s28, %s5825_s6 }
 0x8fa   : > { %p4779_p12 = scmp.lt.u32.totalorder %s4777_s19, %s4773_s2  ;;  %p4781_p1 = scmp.lt.u32.totalorder %s4773_s2, %s5702_s28 }
 0x8fb   : > { %p4775_p4 = pnand %p4774_p0, %p5826_p6 }
 0x8fc   : > { %p4780_p5 = por %p4779_p12, %p4778_p3 }
 0x8fd   : > { %p4776_p10 = pneg %p4775_p4 }
 0x8fe   : > { %p4782_p9 = por %p4781_p1, %p4780_p5 }
 0x900   : > { %p4783_p11 = pnand %p4782_p9, %p4776_p10 }
 0x902   : > { %4786 = shalt.err (!%p4783_p11)
}
 0x903   : > { %s4905_s27 = smov 128   ;;  %s4906_s16 = smov 8  }
 0x904   : > { %4013 = dma.vmem_to_hbm [thread:$0]  (%p5826_p6), %s5704_s24, 2048, %s5702_s28, %s5710_s9, %s4905_s27, %s4905_s27, %s4906_s16  }
 0x905 PF: > { %p4050_p8 = scmp.ge.s32.totalorder %s4893_s7, 2  ;;  %s3371_s12 = sand.u32 1, %s4853_s21  }
 0x906   : > { %p5827_p13 = scmp.ne.s32.totalorder %s5814_s20, 0  ;;  %s3372_s3 = scalar_lea.sflag [#allocation6], %s3371_s12 }
 0x908   : > { %p4036_p2 = pnand %p4050_p8, %p5827_p13 }
 0x90a   : > { %4848 = dma.done.wait (!%p4036_p2), %s3372_s3, 2048  }
 0x90b   : > { %4850 = vsyncadd (!%p4036_p2), %s3372_s3, 4294965248  ;;  %s25_s7 = sadd.s32 1, %s4893_s7   ;;  %s5828_s21 = smov %s4857_s22 }
 0x90c   : > { %p22_p7 = scmp.ge.s32.totalorder %s25_s7, 6   ;;  %s5829_s22 = smov %s4861_s23 }
 0x90d   : > { %s5830_s23 = smov %s5202_s0  ;;  %s5831_s24 = smov %s4869_s25 }
 0x90e   : > { %s5832_s25 = smov %s4873_s26  ;;  %s5833_s26 = smov %s5199_s10 }
 0x90f   : > { %s5834_s27 = smov %s4885_s29  ;;  %s5835_s28 = smov %s4889_s30 }
 0x910   : > { %s5836_s29 = smov %s5839_s14  ;;  %s5837_s30 = smov %s5843_s11 }
 0x911   :  { %24 = sbr.rel (!%p22_p7) target bundleno = 19 (0x13), region = 114 }
 0x918   :  { %3377 = vsyncpa [#allocation5], 1 }
 0x919   :  { %3379 = vsyncpa [#allocation5 + $0x1], 1 }
 0x91a   :  { %3380 = vsyncpa [#allocation8], 1 }
 0x91b   :  { %3381 = vsyncpa [#allocation11], 1 }
 0x91c   :  { %3382 = vsyncpa [#allocation14], 1 }
 0x91d   :  { %3383 = vsyncpa [#allocation6], 1 }
 0x91e   :  { %3385 = vsyncpa [#allocation6 + $0x1], 1 }

</bundles_post_ra>
